<compile_context>
chip_gen: v7x
topology: tpu7x:2x2x1
jax: 0.10.0
libtpu: 0.0.40
codegen_flags: <defaults>
</compile_context>

<pallas_src>
import functools

import jax
import jax.numpy as jnp
from jax import lax
from jax.experimental import pallas as pl
from jax.experimental.pallas import tpu as pltpu

LANES = 128        # vreg lane width; atom-table width and gather chunk width
SUBLANES = 8       # vreg sublane count; xyz lives in sublanes 0..2
OUT_ROWS = 4       # output rows: 0..2 = edge vector xyz, 3 = edge length
MAX_TILE_E = 2048  # edges per grid step for large E (multiple of LANES)


def _round_up(x, m):
    return ((x + m - 1) // m) * m


# ---------------------------------------------------------------------------
# In-kernel gathers: pos_tbl [8,128] f32 (rows 0..2 = x/y/z, lanes = atom id),
# idx [1,128] i32 -> returns [8,128] f32 = pos_tbl[:, idx].
# ---------------------------------------------------------------------------
def _gather_take(pos_tbl, idx):
    # Direct dynamic gather along the lane axis.
    # NOTE: 'promise_in_bounds' assumes all edge indices are < N <= 128;
    # out-of-range user indices are undefined behavior, not an error.
    idx_b = jnp.broadcast_to(idx, (SUBLANES, LANES))
    return jnp.take_along_axis(pos_tbl, idx_b, axis=1, mode="promise_in_bounds")


def _gather_onehot(pos_tbl, idx):
    # Fallback: one-hot MXU gather (used only if the gather lowering above is
    # unavailable in the installed Pallas/Mosaic build).
    atom = lax.broadcasted_iota(jnp.int32, (LANES, LANES), 0)   # [atom, edge]
    onehot = (atom == idx).astype(jnp.float32)                  # [128, 128]
    return jnp.dot(pos_tbl, onehot, preferred_element_type=jnp.float32)


_GATHERS = {"take": _gather_take, "onehot": _gather_onehot}
_GATHER_NAME = None  # cached gather-path decision (probed once)


def _select_gather():
    """Probe once (lowering only, no device sync) which gather path lowers."""
    global _GATHER_NAME
    if _GATHER_NAME is not None:
        return _GATHER_NAME

    def probe_kernel(p_ref, i_ref, o_ref):
        o_ref[...] = _gather_take(p_ref[...], i_ref[...])

    probe = pl.pallas_call(
        probe_kernel,
        out_shape=jax.ShapeDtypeStruct((SUBLANES, LANES), jnp.float32),
    )
    try:
        jax.jit(probe).lower(
            jax.ShapeDtypeStruct((SUBLANES, LANES), jnp.float32),
            jax.ShapeDtypeStruct((1, LANES), jnp.int32),
        )
        _GATHER_NAME = "take"
    except Exception as e:  # log which path was taken (env-dependent fallback)
        print("[base_model_forward] in-kernel gather lowering unavailable "
              f"({type(e).__name__}); using one-hot MXU gather fallback.")
        _GATHER_NAME = "onehot"
    return _GATHER_NAME


# ---------------------------------------------------------------------------
# Kernel: one edge tile (tile_e edges, lane-dense) per grid step.
# Output block: [4, tile_e]  (rows 0..2 = vec xyz, row 3 = length).
# ---------------------------------------------------------------------------
def _edge_kernel(pos_ref, src_ref, dst_ref, out_ref, *, gather, n_chunks):
    pos_tbl = pos_ref[...]                                   # [8, 128] f32
    # Hoisted once (JAX does not CSE broadcast_in_dim inside loops).
    row = lax.broadcasted_iota(jnp.int32, (OUT_ROWS, LANES), 0)

    def chunk(lo):
        src = src_ref[:, pl.ds(lo, LANES)]                   # [1, 128] i32
        dst = dst_ref[:, pl.ds(lo, LANES)]                   # [1, 128] i32
        p_src = gather(pos_tbl, src)                         # [8, 128]
        p_dst = gather(pos_tbl, dst)                         # [8, 128]
        vec = p_src - p_dst                                  # rows 3..7 stay 0
        sq = vec * vec
        # Length without cross-lane reduction; sqrt goes to the EUP slot.
        length = jnp.sqrt(sq[0:1, :] + sq[1:2, :] + sq[2:3, :])   # [1, 128]
        # rows 0..2 = vec, row 3 = length (pure VPU select, no concat).
        out_chunk = jnp.where(row < 3, vec[:OUT_ROWS, :], length)
        out_ref[:, pl.ds(lo, LANES)] = out_chunk

    if n_chunks <= 8:
        # Small tile (single-step case): static unroll, constant offsets.
        for c in range(n_chunks):
            chunk(c * LANES)
    else:
        # Large tile: bounded code size / live ranges via fori_loop.
        def body(c, carry):
            chunk(pl.multiple_of(c * LANES, LANES))
            return carry
        lax.fori_loop(0, n_chunks, body, None, unroll=4)


# ---------------------------------------------------------------------------
# Cached, jitted forward per static shape configuration.
# ---------------------------------------------------------------------------
@functools.lru_cache(maxsize=None)
def _build_forward(n_atoms, n_edges, n_graphs, compute_forces,
                   e_pad, tile_e, n_tiles, gather_name):
    gather = _GATHERS[gather_name]
    n_chunks = tile_e // LANES

    edge_call = pl.pallas_call(
        functools.partial(_edge_kernel, gather=gather, n_chunks=n_chunks),
        out_shape=jax.ShapeDtypeStruct((OUT_ROWS, e_pad), jnp.float32),
        grid=(n_tiles,),
        in_specs=[
            pl.BlockSpec((SUBLANES, LANES), lambda i: (0, 0)),   # atom table
            pl.BlockSpec((1, tile_e), lambda i: (0, i)),         # src ids
            pl.BlockSpec((1, tile_e), lambda i: (0, i)),         # dst ids
        ],
        out_specs=pl.BlockSpec((OUT_ROWS, tile_e), lambda i: (0, i)),
        compiler_params=pltpu.CompilerParams(
            # Only shard across TensorCores when each core keeps >= 2 tiles
            # (intra-core double-buffering); tiny E uses a single step.
            dimension_semantics=(("parallel",) if n_tiles >= 4
                                 else ("arbitrary",)),
            vmem_limit_bytes=32 * 1024 * 1024,
        ),
    )

    @jax.jit
    def fwd(pos, edge_index):
        # Lane-dense atom table: [8,128], rows 0..2 = x/y/z, lanes = atom id.
        pos_tbl = (jnp.zeros((SUBLANES, LANES), jnp.float32)
                   .at[:3, :n_atoms].set(pos.T))
        # Lane-dense edge endpoint ids, padded with index 0 (valid, in-bounds;
        # padded edges are sliced off below).
        src = jnp.zeros((1, e_pad), jnp.int32).at[0, :n_edges].set(edge_index[0])
        dst = jnp.zeros((1, e_pad), jnp.int32).at[0, :n_edges].set(edge_index[1])

        out = edge_call(pos_tbl, src, dst)                   # [4, e_pad]

        result = {
            "edge_vector": out[:3, :n_edges].T,              # pos[src]-pos[dst]
            "edge_length": out[3, :n_edges],
            # Empty ModuleDict -> no per-atom energies; per-graph sum is zero.
            # TODO(synk): with real interaction modules, energy must be the
            # segment-sum of their per-atom outputs and forces = -grad(energy).
            "energy": jnp.zeros((n_graphs,), jnp.float32),
        }
        if compute_forces:
            result["forces"] = jnp.zeros((n_atoms, 3), jnp.float32)
        return result

    return fwd


# ---------------------------------------------------------------------------
# Wrapper: BaseModel.forward semantics.
# ---------------------------------------------------------------------------
def base_model_forward(data, compute_forces=True, compute_virial=False,
                       num_graphs=2):
    pos = jnp.asarray(data["pos"], jnp.float32)              # [N, 3]
    edge_index = jnp.asarray(data["edge_index"], jnp.int32)  # [2, E]
    # data["batch"] is unused: no interaction modules -> per-atom energies are
    # identically zero, so the per-graph segment-sum is exactly zero.
    # TODO(synk): compute_virial path (cell/strain gradient) omitted -- no cell
    # tensor is defined for the base module.

    N = pos.shape[0]
    E = edge_index.shape[1]

    if N > LANES:
        # TODO(synk): for N > 128 atoms, chunk the atom table over 128-lane
        # pieces (gather + select per chunk) or use a DMA gather.
        raise NotImplementedError("base_model_forward kernel supports N <= 128")

    # Grid sizing: single step for small E, 2048-edge tiles for large E.
    e_pad = _round_up(max(E, LANES), LANES)
    if e_pad <= MAX_TILE_E:
        tile_e = e_pad
    else:
        tile_e = MAX_TILE_E
        e_pad = _round_up(e_pad, tile_e)
    n_tiles = e_pad // tile_e

    fwd = _build_forward(N, E, int(num_graphs), bool(compute_forces),
                         e_pad, tile_e, n_tiles, _select_gather())
    return fwd(pos, edge_index)


if __name__ == "__main__":
    key = jax.random.PRNGKey(0)
    N, E, G = 64, 700, 2

    k_pos, k_src, k_off = jax.random.split(key, 3)
    pos = jax.random.normal(k_pos, (N, 3), jnp.float32) * 2.0
    src = jax.random.randint(k_src, (E,), 0, N, dtype=jnp.int32)
    off = jax.random.randint(k_off, (E,), 1, N, dtype=jnp.int32)
    dst = (src + off) % N                        # no self-edges
    edge_index = jnp.stack([src, dst], axis=0)   # [2, E]
    batch = jnp.concatenate(
        [jnp.zeros(N // 2, jnp.int32), jnp.ones(N - N // 2, jnp.int32)])

    data = {"pos": pos, "edge_index": edge_index, "batch": batch}

    result = base_model_forward(data, compute_forces=True, num_graphs=G)
    result = jax.block_until_ready(result)

    # Reference check against plain JAX compute_edge_data.
    ref_vec = pos[edge_index[0]] - pos[edge_index[1]]
    ref_len = jnp.linalg.norm(ref_vec, axis=-1)
    assert jnp.allclose(result["edge_vector"], ref_vec, atol=1e-5)
    assert jnp.allclose(result["edge_length"], ref_len, atol=1e-5)
    assert result["energy"].shape == (G,)
    assert jnp.all(result["energy"] == 0.0)
    assert result["forces"].shape == (N, 3)

    print("KERNEL_OK")
</pallas_src>

<mosaic_0001>
module attributes {stable_mosaic.version = 11 : i64} {
  func.func @_edge_kernel(%arg0: i32, %arg1: memref<8x128xf32, #tpu.memory_space<vmem>>, %arg2: memref<1x768xi32, #tpu.memory_space<vmem>>, %arg3: memref<1x768xi32, #tpu.memory_space<vmem>>, %arg4: memref<4x768xf32, #tpu.memory_space<vmem>>) attributes {dimension_semantics = [#tpu.dimension_semantics<arbitrary>], iteration_bounds = array<i64: 1>, scalar_prefetch = 0 : i64, scratch_operands = 0 : i64, tpu.core_type = #tpu.core_type<tc>, window_params = [{pipeline_mode = #tpu.pipeline_mode<synchronous>, transform_indices = @transform_0, window_bounds = array<i64: 8, 128>}, {transform_indices = @transform_1, window_bounds = array<i64: 1, 768>}, {transform_indices = @transform_2, window_bounds = array<i64: 1, 768>}, {transform_indices = @transform_3, window_bounds = array<i64: 4, 768>}]} {
    %c0 = arith.constant 0 : index
    %c0_0 = arith.constant 0 : index
    %0 = vector.load %arg1[%c0, %c0_0] : memref<8x128xf32, #tpu.memory_space<vmem>>, vector<8x128xf32>
    %1 = tpu.iota {dimensions = array<i32: 0>} : vector<4x128xi32>
    %c0_1 = arith.constant 0 : index
    %c0_2 = arith.constant 0 : index
    %2 = vector.load %arg2[%c0_1, %c0_2] : memref<1x768xi32, #tpu.memory_space<vmem>>, vector<1x128xi32>
    %c0_3 = arith.constant 0 : index
    %c0_4 = arith.constant 0 : index
    %3 = vector.load %arg3[%c0_3, %c0_4] : memref<1x768xi32, #tpu.memory_space<vmem>>, vector<1x128xi32>
    %4 = tpu.iota {dimensions = array<i32: 0>} : vector<128x128xi32>
    %5 = vector.broadcast %2 : vector<1x128xi32> to vector<128x128xi32>
    %6 = arith.cmpi eq, %4, %5 : vector<128x128xi32>
    %7 = arith.extui %6 : vector<128x128xi1> to vector<128x128xi32>
    %8 = arith.sitofp %7 : vector<128x128xi32> to vector<128x128xf32>
    %cst = arith.constant dense<0.000000e+00> : vector<8x128xf32>
    %9 = tpu.matmul %0, %8, %cst {dimension_numbers = #tpu.dot_dimension_numbers<[1], [0], [0], [1], [0, 0, 1, 1], [], []>} : vector<8x128xf32>, vector<128x128xf32>, vector<8x128xf32> -> vector<8x128xf32>
    %10 = tpu.iota {dimensions = array<i32: 0>} : vector<128x128xi32>
    %11 = vector.broadcast %3 : vector<1x128xi32> to vector<128x128xi32>
    %12 = arith.cmpi eq, %10, %11 : vector<128x128xi32>
    %13 = arith.extui %12 : vector<128x128xi1> to vector<128x128xi32>
    %14 = arith.sitofp %13 : vector<128x128xi32> to vector<128x128xf32>
    %cst_5 = arith.constant dense<0.000000e+00> : vector<8x128xf32>
    %15 = tpu.matmul %0, %14, %cst_5 {dimension_numbers = #tpu.dot_dimension_numbers<[1], [0], [0], [1], [0, 0, 1, 1], [], []>} : vector<8x128xf32>, vector<128x128xf32>, vector<8x128xf32> -> vector<8x128xf32>
    %16 = arith.subf %9, %15 : vector<8x128xf32>
    %17 = arith.mulf %16, %16 : vector<8x128xf32>
    %18 = vector.extract_strided_slice %17 {offsets = [0, 0], sizes = [1, 128], strides = [1, 1]} : vector<8x128xf32> to vector<1x128xf32>
    %19 = vector.extract_strided_slice %17 {offsets = [1, 0], sizes = [1, 128], strides = [1, 1]} : vector<8x128xf32> to vector<1x128xf32>
    %20 = arith.addf %18, %19 : vector<1x128xf32>
    %21 = vector.extract_strided_slice %17 {offsets = [2, 0], sizes = [1, 128], strides = [1, 1]} : vector<8x128xf32> to vector<1x128xf32>
    %22 = arith.addf %20, %21 : vector<1x128xf32>
    %23 = math.sqrt %22 : vector<1x128xf32>
    %c3_i32 = arith.constant 3 : i32
    %24 = vector.broadcast %c3_i32 : i32 to vector<4x128xi32>
    %25 = arith.cmpi slt, %1, %24 : vector<4x128xi32>
    %26 = vector.extract_strided_slice %16 {offsets = [0, 0], sizes = [4, 128], strides = [1, 1]} : vector<8x128xf32> to vector<4x128xf32>
    %27 = vector.shape_cast %23 : vector<1x128xf32> to vector<1x128xf32>
    %28 = vector.broadcast %27 : vector<1x128xf32> to vector<4x128xf32>
    %29 = arith.select %25, %26, %28 : vector<4x128xi1>, vector<4x128xf32>
    %c0_6 = arith.constant 0 : index
    %c0_7 = arith.constant 0 : index
    %30 = vector.load %arg4[%c0_6, %c0_7] : memref<4x768xf32, #tpu.memory_space<vmem>>, vector<4x128xf32>
    tpu.vector_store %arg4[%c0_6, %c0_7], %29 {strides = array<i32>} : memref<4x768xf32, #tpu.memory_space<vmem>>, vector<4x128xf32>,
    %c0_8 = arith.constant 0 : index
    %c128 = arith.constant 128 : index
    %31 = vector.load %arg2[%c0_8, %c128] : memref<1x768xi32, #tpu.memory_space<vmem>>, vector<1x128xi32>
    %c0_9 = arith.constant 0 : index
    %c128_10 = arith.constant 128 : index
    %32 = vector.load %arg3[%c0_9, %c128_10] : memref<1x768xi32, #tpu.memory_space<vmem>>, vector<1x128xi32>
    %33 = tpu.iota {dimensions = array<i32: 0>} : vector<128x128xi32>
    %34 = vector.broadcast %31 : vector<1x128xi32> to vector<128x128xi32>
    %35 = arith.cmpi eq, %33, %34 : vector<128x128xi32>
    %36 = arith.extui %35 : vector<128x128xi1> to vector<128x128xi32>
    %37 = arith.sitofp %36 : vector<128x128xi32> to vector<128x128xf32>
    %cst_11 = arith.constant dense<0.000000e+00> : vector<8x128xf32>
    %38 = tpu.matmul %0, %37, %cst_11 {dimension_numbers = #tpu.dot_dimension_numbers<[1], [0], [0], [1], [0, 0, 1, 1], [], []>} : vector<8x128xf32>, vector<128x128xf32>, vector<8x128xf32> -> vector<8x128xf32>
    %39 = tpu.iota {dimensions = array<i32: 0>} : vector<128x128xi32>
    %40 = vector.broadcast %32 : vector<1x128xi32> to vector<128x128xi32>
    %41 = arith.cmpi eq, %39, %40 : vector<128x128xi32>
    %42 = arith.extui %41 : vector<128x128xi1> to vector<128x128xi32>
    %43 = arith.sitofp %42 : vector<128x128xi32> to vector<128x128xf32>
    %cst_12 = arith.constant dense<0.000000e+00> : vector<8x128xf32>
    %44 = tpu.matmul %0, %43, %cst_12 {dimension_numbers = #tpu.dot_dimension_numbers<[1], [0], [0], [1], [0, 0, 1, 1], [], []>} : vector<8x128xf32>, vector<128x128xf32>, vector<8x128xf32> -> vector<8x128xf32>
    %45 = arith.subf %38, %44 : vector<8x128xf32>
    %46 = arith.mulf %45, %45 : vector<8x128xf32>
    %47 = vector.extract_strided_slice %46 {offsets = [0, 0], sizes = [1, 128], strides = [1, 1]} : vector<8x128xf32> to vector<1x128xf32>
    %48 = vector.extract_strided_slice %46 {offsets = [1, 0], sizes = [1, 128], strides = [1, 1]} : vector<8x128xf32> to vector<1x128xf32>
    %49 = arith.addf %47, %48 : vector<1x128xf32>
    %50 = vector.extract_strided_slice %46 {offsets = [2, 0], sizes = [1, 128], strides = [1, 1]} : vector<8x128xf32> to vector<1x128xf32>
    %51 = arith.addf %49, %50 : vector<1x128xf32>
    %52 = math.sqrt %51 : vector<1x128xf32>
    %c3_i32_13 = arith.constant 3 : i32
    %53 = vector.broadcast %c3_i32_13 : i32 to vector<4x128xi32>
    %54 = arith.cmpi slt, %1, %53 : vector<4x128xi32>
    %55 = vector.extract_strided_slice %45 {offsets = [0, 0], sizes = [4, 128], strides = [1, 1]} : vector<8x128xf32> to vector<4x128xf32>
    %56 = vector.shape_cast %52 : vector<1x128xf32> to vector<1x128xf32>
    %57 = vector.broadcast %56 : vector<1x128xf32> to vector<4x128xf32>
    %58 = arith.select %54, %55, %57 : vector<4x128xi1>, vector<4x128xf32>
    %c0_14 = arith.constant 0 : index
    %c128_15 = arith.constant 128 : index
    %59 = vector.load %arg4[%c0_14, %c128_15] : memref<4x768xf32, #tpu.memory_space<vmem>>, vector<4x128xf32>
    tpu.vector_store %arg4[%c0_14, %c128_15], %58 {strides = array<i32>} : memref<4x768xf32, #tpu.memory_space<vmem>>, vector<4x128xf32>,
    %c0_16 = arith.constant 0 : index
    %c256 = arith.constant 256 : index
    %60 = vector.load %arg2[%c0_16, %c256] : memref<1x768xi32, #tpu.memory_space<vmem>>, vector<1x128xi32>
    %c0_17 = arith.constant 0 : index
    %c256_18 = arith.constant 256 : index
    %61 = vector.load %arg3[%c0_17, %c256_18] : memref<1x768xi32, #tpu.memory_space<vmem>>, vector<1x128xi32>
    %62 = tpu.iota {dimensions = array<i32: 0>} : vector<128x128xi32>
    %63 = vector.broadcast %60 : vector<1x128xi32> to vector<128x128xi32>
    %64 = arith.cmpi eq, %62, %63 : vector<128x128xi32>
    %65 = arith.extui %64 : vector<128x128xi1> to vector<128x128xi32>
    %66 = arith.sitofp %65 : vector<128x128xi32> to vector<128x128xf32>
    %cst_19 = arith.constant dense<0.000000e+00> : vector<8x128xf32>
    %67 = tpu.matmul %0, %66, %cst_19 {dimension_numbers = #tpu.dot_dimension_numbers<[1], [0], [0], [1], [0, 0, 1, 1], [], []>} : vector<8x128xf32>, vector<128x128xf32>, vector<8x128xf32> -> vector<8x128xf32>
    %68 = tpu.iota {dimensions = array<i32: 0>} : vector<128x128xi32>
    %69 = vector.broadcast %61 : vector<1x128xi32> to vector<128x128xi32>
    %70 = arith.cmpi eq, %68, %69 : vector<128x128xi32>
    %71 = arith.extui %70 : vector<128x128xi1> to vector<128x128xi32>
    %72 = arith.sitofp %71 : vector<128x128xi32> to vector<128x128xf32>
    %cst_20 = arith.constant dense<0.000000e+00> : vector<8x128xf32>
    %73 = tpu.matmul %0, %72, %cst_20 {dimension_numbers = #tpu.dot_dimension_numbers<[1], [0], [0], [1], [0, 0, 1, 1], [], []>} : vector<8x128xf32>, vector<128x128xf32>, vector<8x128xf32> -> vector<8x128xf32>
    %74 = arith.subf %67, %73 : vector<8x128xf32>
    %75 = arith.mulf %74, %74 : vector<8x128xf32>
    %76 = vector.extract_strided_slice %75 {offsets = [0, 0], sizes = [1, 128], strides = [1, 1]} : vector<8x128xf32> to vector<1x128xf32>
    %77 = vector.extract_strided_slice %75 {offsets = [1, 0], sizes = [1, 128], strides = [1, 1]} : vector<8x128xf32> to vector<1x128xf32>
    %78 = arith.addf %76, %77 : vector<1x128xf32>
    %79 = vector.extract_strided_slice %75 {offsets = [2, 0], sizes = [1, 128], strides = [1, 1]} : vector<8x128xf32> to vector<1x128xf32>
    %80 = arith.addf %78, %79 : vector<1x128xf32>
    %81 = math.sqrt %80 : vector<1x128xf32>
    %c3_i32_21 = arith.constant 3 : i32
    %82 = vector.broadcast %c3_i32_21 : i32 to vector<4x128xi32>
    %83 = arith.cmpi slt, %1, %82 : vector<4x128xi32>
    %84 = vector.extract_strided_slice %74 {offsets = [0, 0], sizes = [4, 128], strides = [1, 1]} : vector<8x128xf32> to vector<4x128xf32>
    %85 = vector.shape_cast %81 : vector<1x128xf32> to vector<1x128xf32>
    %86 = vector.broadcast %85 : vector<1x128xf32> to vector<4x128xf32>
    %87 = arith.select %83, %84, %86 : vector<4x128xi1>, vector<4x128xf32>
    %c0_22 = arith.constant 0 : index
    %c256_23 = arith.constant 256 : index
    %88 = vector.load %arg4[%c0_22, %c256_23] : memref<4x768xf32, #tpu.memory_space<vmem>>, vector<4x128xf32>
    tpu.vector_store %arg4[%c0_22, %c256_23], %87 {strides = array<i32>} : memref<4x768xf32, #tpu.memory_space<vmem>>, vector<4x128xf32>,
    %c0_24 = arith.constant 0 : index
    %c384 = arith.constant 384 : index
    %89 = vector.load %arg2[%c0_24, %c384] : memref<1x768xi32, #tpu.memory_space<vmem>>, vector<1x128xi32>
    %c0_25 = arith.constant 0 : index
    %c384_26 = arith.constant 384 : index
    %90 = vector.load %arg3[%c0_25, %c384_26] : memref<1x768xi32, #tpu.memory_space<vmem>>, vector<1x128xi32>
    %91 = tpu.iota {dimensions = array<i32: 0>} : vector<128x128xi32>
    %92 = vector.broadcast %89 : vector<1x128xi32> to vector<128x128xi32>
    %93 = arith.cmpi eq, %91, %92 : vector<128x128xi32>
    %94 = arith.extui %93 : vector<128x128xi1> to vector<128x128xi32>
    %95 = arith.sitofp %94 : vector<128x128xi32> to vector<128x128xf32>
    %cst_27 = arith.constant dense<0.000000e+00> : vector<8x128xf32>
    %96 = tpu.matmul %0, %95, %cst_27 {dimension_numbers = #tpu.dot_dimension_numbers<[1], [0], [0], [1], [0, 0, 1, 1], [], []>} : vector<8x128xf32>, vector<128x128xf32>, vector<8x128xf32> -> vector<8x128xf32>
    %97 = tpu.iota {dimensions = array<i32: 0>} : vector<128x128xi32>
    %98 = vector.broadcast %90 : vector<1x128xi32> to vector<128x128xi32>
    %99 = arith.cmpi eq, %97, %98 : vector<128x128xi32>
    %100 = arith.extui %99 : vector<128x128xi1> to vector<128x128xi32>
    %101 = arith.sitofp %100 : vector<128x128xi32> to vector<128x128xf32>
    %cst_28 = arith.constant dense<0.000000e+00> : vector<8x128xf32>
    %102 = tpu.matmul %0, %101, %cst_28 {dimension_numbers = #tpu.dot_dimension_numbers<[1], [0], [0], [1], [0, 0, 1, 1], [], []>} : vector<8x128xf32>, vector<128x128xf32>, vector<8x128xf32> -> vector<8x128xf32>
    %103 = arith.subf %96, %102 : vector<8x128xf32>
    %104 = arith.mulf %103, %103 : vector<8x128xf32>
    %105 = vector.extract_strided_slice %104 {offsets = [0, 0], sizes = [1, 128], strides = [1, 1]} : vector<8x128xf32> to vector<1x128xf32>
    %106 = vector.extract_strided_slice %104 {offsets = [1, 0], sizes = [1, 128], strides = [1, 1]} : vector<8x128xf32> to vector<1x128xf32>
    %107 = arith.addf %105, %106 : vector<1x128xf32>
    %108 = vector.extract_strided_slice %104 {offsets = [2, 0], sizes = [1, 128], strides = [1, 1]} : vector<8x128xf32> to vector<1x128xf32>
    %109 = arith.addf %107, %108 : vector<1x128xf32>
    %110 = math.sqrt %109 : vector<1x128xf32>
    %c3_i32_29 = arith.constant 3 : i32
    %111 = vector.broadcast %c3_i32_29 : i32 to vector<4x128xi32>
    %112 = arith.cmpi slt, %1, %111 : vector<4x128xi32>
    %113 = vector.extract_strided_slice %103 {offsets = [0, 0], sizes = [4, 128], strides = [1, 1]} : vector<8x128xf32> to vector<4x128xf32>
    %114 = vector.shape_cast %110 : vector<1x128xf32> to vector<1x128xf32>
    %115 = vector.broadcast %114 : vector<1x128xf32> to vector<4x128xf32>
    %116 = arith.select %112, %113, %115 : vector<4x128xi1>, vector<4x128xf32>
    %c0_30 = arith.constant 0 : index
    %c384_31 = arith.constant 384 : index
    %117 = vector.load %arg4[%c0_30, %c384_31] : memref<4x768xf32, #tpu.memory_space<vmem>>, vector<4x128xf32>
    tpu.vector_store %arg4[%c0_30, %c384_31], %116 {strides = array<i32>} : memref<4x768xf32, #tpu.memory_space<vmem>>, vector<4x128xf32>,
    %c0_32 = arith.constant 0 : index
    %c512 = arith.constant 512 : index
    %118 = vector.load %arg2[%c0_32, %c512] : memref<1x768xi32, #tpu.memory_space<vmem>>, vector<1x128xi32>
    %c0_33 = arith.constant 0 : index
    %c512_34 = arith.constant 512 : index
    %119 = vector.load %arg3[%c0_33, %c512_34] : memref<1x768xi32, #tpu.memory_space<vmem>>, vector<1x128xi32>
    %120 = tpu.iota {dimensions = array<i32: 0>} : vector<128x128xi32>
    %121 = vector.broadcast %118 : vector<1x128xi32> to vector<128x128xi32>
    %122 = arith.cmpi eq, %120, %121 : vector<128x128xi32>
    %123 = arith.extui %122 : vector<128x128xi1> to vector<128x128xi32>
    %124 = arith.sitofp %123 : vector<128x128xi32> to vector<128x128xf32>
    %cst_35 = arith.constant dense<0.000000e+00> : vector<8x128xf32>
    %125 = tpu.matmul %0, %124, %cst_35 {dimension_numbers = #tpu.dot_dimension_numbers<[1], [0], [0], [1], [0, 0, 1, 1], [], []>} : vector<8x128xf32>, vector<128x128xf32>, vector<8x128xf32> -> vector<8x128xf32>
    %126 = tpu.iota {dimensions = array<i32: 0>} : vector<128x128xi32>
    %127 = vector.broadcast %119 : vector<1x128xi32> to vector<128x128xi32>
    %128 = arith.cmpi eq, %126, %127 : vector<128x128xi32>
    %129 = arith.extui %128 : vector<128x128xi1> to vector<128x128xi32>
    %130 = arith.sitofp %129 : vector<128x128xi32> to vector<128x128xf32>
    %cst_36 = arith.constant dense<0.000000e+00> : vector<8x128xf32>
    %131 = tpu.matmul %0, %130, %cst_36 {dimension_numbers = #tpu.dot_dimension_numbers<[1], [0], [0], [1], [0, 0, 1, 1], [], []>} : vector<8x128xf32>, vector<128x128xf32>, vector<8x128xf32> -> vector<8x128xf32>
    %132 = arith.subf %125, %131 : vector<8x128xf32>
    %133 = arith.mulf %132, %132 : vector<8x128xf32>
    %134 = vector.extract_strided_slice %133 {offsets = [0, 0], sizes = [1, 128], strides = [1, 1]} : vector<8x128xf32> to vector<1x128xf32>
    %135 = vector.extract_strided_slice %133 {offsets = [1, 0], sizes = [1, 128], strides = [1, 1]} : vector<8x128xf32> to vector<1x128xf32>
    %136 = arith.addf %134, %135 : vector<1x128xf32>
    %137 = vector.extract_strided_slice %133 {offsets = [2, 0], sizes = [1, 128], strides = [1, 1]} : vector<8x128xf32> to vector<1x128xf32>
    %138 = arith.addf %136, %137 : vector<1x128xf32>
    %139 = math.sqrt %138 : vector<1x128xf32>
    %c3_i32_37 = arith.constant 3 : i32
    %140 = vector.broadcast %c3_i32_37 : i32 to vector<4x128xi32>
    %141 = arith.cmpi slt, %1, %140 : vector<4x128xi32>
    %142 = vector.extract_strided_slice %132 {offsets = [0, 0], sizes = [4, 128], strides = [1, 1]} : vector<8x128xf32> to vector<4x128xf32>
    %143 = vector.shape_cast %139 : vector<1x128xf32> to vector<1x128xf32>
    %144 = vector.broadcast %143 : vector<1x128xf32> to vector<4x128xf32>
    %145 = arith.select %141, %142, %144 : vector<4x128xi1>, vector<4x128xf32>
    %c0_38 = arith.constant 0 : index
    %c512_39 = arith.constant 512 : index
    %146 = vector.load %arg4[%c0_38, %c512_39] : memref<4x768xf32, #tpu.memory_space<vmem>>, vector<4x128xf32>
    tpu.vector_store %arg4[%c0_38, %c512_39], %145 {strides = array<i32>} : memref<4x768xf32, #tpu.memory_space<vmem>>, vector<4x128xf32>,
    %c0_40 = arith.constant 0 : index
    %c640 = arith.constant 640 : index
    %147 = vector.load %arg2[%c0_40, %c640] : memref<1x768xi32, #tpu.memory_space<vmem>>, vector<1x128xi32>
    %c0_41 = arith.constant 0 : index
    %c640_42 = arith.constant 640 : index
    %148 = vector.load %arg3[%c0_41, %c640_42] : memref<1x768xi32, #tpu.memory_space<vmem>>, vector<1x128xi32>
    %149 = tpu.iota {dimensions = array<i32: 0>} : vector<128x128xi32>
    %150 = vector.broadcast %147 : vector<1x128xi32> to vector<128x128xi32>
    %151 = arith.cmpi eq, %149, %150 : vector<128x128xi32>
    %152 = arith.extui %151 : vector<128x128xi1> to vector<128x128xi32>
    %153 = arith.sitofp %152 : vector<128x128xi32> to vector<128x128xf32>
    %cst_43 = arith.constant dense<0.000000e+00> : vector<8x128xf32>
    %154 = tpu.matmul %0, %153, %cst_43 {dimension_numbers = #tpu.dot_dimension_numbers<[1], [0], [0], [1], [0, 0, 1, 1], [], []>} : vector<8x128xf32>, vector<128x128xf32>, vector<8x128xf32> -> vector<8x128xf32>
    %155 = tpu.iota {dimensions = array<i32: 0>} : vector<128x128xi32>
    %156 = vector.broadcast %148 : vector<1x128xi32> to vector<128x128xi32>
    %157 = arith.cmpi eq, %155, %156 : vector<128x128xi32>
    %158 = arith.extui %157 : vector<128x128xi1> to vector<128x128xi32>
    %159 = arith.sitofp %158 : vector<128x128xi32> to vector<128x128xf32>
    %cst_44 = arith.constant dense<0.000000e+00> : vector<8x128xf32>
    %160 = tpu.matmul %0, %159, %cst_44 {dimension_numbers = #tpu.dot_dimension_numbers<[1], [0], [0], [1], [0, 0, 1, 1], [], []>} : vector<8x128xf32>, vector<128x128xf32>, vector<8x128xf32> -> vector<8x128xf32>
    %161 = arith.subf %154, %160 : vector<8x128xf32>
    %162 = arith.mulf %161, %161 : vector<8x128xf32>
    %163 = vector.extract_strided_slice %162 {offsets = [0, 0], sizes = [1, 128], strides = [1, 1]} : vector<8x128xf32> to vector<1x128xf32>
    %164 = vector.extract_strided_slice %162 {offsets = [1, 0], sizes = [1, 128], strides = [1, 1]} : vector<8x128xf32> to vector<1x128xf32>
    %165 = arith.addf %163, %164 : vector<1x128xf32>
    %166 = vector.extract_strided_slice %162 {offsets = [2, 0], sizes = [1, 128], strides = [1, 1]} : vector<8x128xf32> to vector<1x128xf32>
    %167 = arith.addf %165, %166 : vector<1x128xf32>
    %168 = math.sqrt %167 : vector<1x128xf32>
    %c3_i32_45 = arith.constant 3 : i32
    %169 = vector.broadcast %c3_i32_45 : i32 to vector<4x128xi32>
    %170 = arith.cmpi slt, %1, %169 : vector<4x128xi32>
    %171 = vector.extract_strided_slice %161 {offsets = [0, 0], sizes = [4, 128], strides = [1, 1]} : vector<8x128xf32> to vector<4x128xf32>
    %172 = vector.shape_cast %168 : vector<1x128xf32> to vector<1x128xf32>
    %173 = vector.broadcast %172 : vector<1x128xf32> to vector<4x128xf32>
    %174 = arith.select %170, %171, %173 : vector<4x128xi1>, vector<4x128xf32>
    %c0_46 = arith.constant 0 : index
    %c640_47 = arith.constant 640 : index
    %175 = vector.load %arg4[%c0_46, %c640_47] : memref<4x768xf32, #tpu.memory_space<vmem>>, vector<4x128xf32>
    tpu.vector_store %arg4[%c0_46, %c640_47], %174 {strides = array<i32>} : memref<4x768xf32, #tpu.memory_space<vmem>>, vector<4x128xf32>,
    return
  }
  func.func @transform_0(%arg0: i32) -> (i32, i32) {
    %c0_i32 = arith.constant 0 : i32
    %c0_i32_0 = arith.constant 0 : i32
    %c0_i32_1 = arith.constant 0 : i32
    return %c0_i32, %c0_i32_0 : i32, i32
  }
  func.func @transform_1(%arg0: i32) -> (i32, i32) {
    %c0_i32 = arith.constant 0 : i32
    %c0_i32_0 = arith.constant 0 : i32
    return %c0_i32, %arg0 : i32, i32
  }
  func.func @transform_2(%arg0: i32) -> (i32, i32) {
    %c0_i32 = arith.constant 0 : i32
    %c0_i32_0 = arith.constant 0 : i32
    return %c0_i32, %arg0 : i32, i32
  }
  func.func @transform_3(%arg0: i32) -> (i32, i32) {
    %c0_i32 = arith.constant 0 : i32
    %c0_i32_0 = arith.constant 0 : i32
    return %c0_i32, %arg0 : i32, i32
  }
}

</mosaic_0001>

<bundles_post_ra>
// kernel: fwd.1
= control target key start
LH: loop header
LB: loop body
LE: loop exit
PB: predicated region body
PF: predicated region fallthrough
CT: control target
= control target key end

     0   :  { %v15_v0 = vlaneseq  ;;  %v2969_v1 = vmov 0.0|0.0   ;;  %vm4799_vm0 = vmmov 0   ;;  %v2971_v5 = vmov 0.0   ;;  %s4795_s1 = inlined_call_operand.vmem [shape: s32[1,768], index: 1, kind: input, shape index: {}]   ;;  %s4796_s2 = inlined_call_operand.vmem [shape: s32[1,768], index: 2, kind: input, shape index: {}]   ;;  %s4797_s0 = inlined_call_operand.vmem [shape: f32[8,128], index: 0, kind: input, shape index: {}]   ;;  %s4798_s3 = inlined_call_operand.vmem [shape: f32[4,768], index: 3, kind: output, shape index: {}]  }
   0x1   :  { %2665 = vmatprep.subr.bf16.mxu0 %v2969_v1  ;;  %2689 = vmatprep.subr.bf16.mxu1 %v2969_v1  ;;  %v2998_v2 = vld [vmem:[%s4795_s1] ss:$0 sm:$0xff]  ;;  %v2972_v11 = vmov 1.0|1.0   ;;  %v3111_v22 = vld [vmem:[%s4795_s1 + $0x1] ss:$0 sm:$0xff] }
   0x2   :  { %v3000_v3 = vshrl.u32 %v15_v0, 7  ;;  %v3005_v4 = vld [vmem:[%s4796_s2] ss:$0 sm:$0xff]  ;;  %2277 = vmatprep.mubr.msk.f32.mxu0 %vm4799_vm0, %v2971_v5  ;;  %2312 = vmatprep.mubr.msk.f32.mxu1 %vm4799_vm0, %v2971_v5  ;;  %v3123_v23 = vld [vmem:[%s4796_s2 + $0x1] ss:$0 sm:$0xff]  ;;  %v4854_v48 = vmov 0 }
   0x3   :  { %v3143_v25 = vld [vmem:[%s4795_s1 + $0x2] ss:$0 sm:$0xff]  ;;  %v3306_v32 = vld [vmem:[%s4795_s1 + $0x3] ss:$0 sm:$0xff]  ;;  %v3514_v44 = vld [vmem:[%s4795_s1 + $0x4] ss:$0 sm:$0xff] }
   0x4   :  { %v3012_v6 = vadd.s32 8, %v3000_v3  ;;  %vm38_vm1 = vcmp.eq.s32.totalorder %v3000_v3, %v2998_v2  ;;  %v3017_v7 = vadd.s32 16, %v3000_v3  ;;  %vm160_vm2 = vcmp.eq.s32.totalorder %v3000_v3, %v3005_v4  ;;  %v3167_v27 = vld [vmem:[%s4796_s2 + $0x2] ss:$0 sm:$0xff]  ;;  %v3311_v33 = vld [vmem:[%s4796_s2 + $0x3] ss:$0 sm:$0xff] }
   0x5   :  { %v3022_v8 = vadd.s32 24, %v3000_v3  ;;  %v3025_v9 = vadd.s32 32, %v3000_v3  ;;  %v3034_v10 = vadd.s32 40, %v3000_v3  ;;  %v3051_v12 = vadd.s32 48, %v3000_v3  ;;  %v3427_v39 = vld [vmem:[%s4797_s0] sm:$0xff] }
   0x6   :  { %vm39_vm3 = vcmp.eq.s32.totalorder %v3012_v6, %v2998_v2  ;;  %vm161_vm4 = vcmp.eq.s32.totalorder %v3012_v6, %v3005_v4  ;;  %vm40_vm5 = vcmp.eq.s32.totalorder %v3017_v7, %v2998_v2  ;;  %vm162_vm8 = vcmp.eq.s32.totalorder %v3017_v7, %v3005_v4  ;;  %v3519_v45 = vld [vmem:[%s4796_s2 + $0x4] ss:$0 sm:$0xff]  ;;  %v3733_v58 = vld [vmem:[%s4795_s1 + $0x5] ss:$0 sm:$0xff] }
   0x7   :  { %vm2666_vm6 = vmpackc.low %vm39_vm3, %vm38_vm1  ;;  %vm41_vm7 = vcmp.eq.s32.totalorder %v3022_v8, %v2998_v2  ;;  %vm163_vm9 = vcmp.eq.s32.totalorder %v3022_v8, %v3005_v4  ;;  %vm42_vm13 = vcmp.eq.s32.totalorder %v3025_v9, %v2998_v2  ;;  %vm43_vm14 = vcmp.eq.s32.totalorder %v3034_v10, %v2998_v2  ;;  %v3759_v60 = vld [vmem:[%s4796_s2 + $0x5] ss:$0 sm:$0xff] }
   0x8   :  { %2667 = vmatpush3.bf16.msk.msra.mxu0 %vm2666_vm6, %v2972_v11  ;;  %vm2690_vm10 = vmpackc.low %vm161_vm4, %vm160_vm2  ;;  %v3054_v13 = vadd.s32 56, %v3000_v3  ;;  %vm164_vm15 = vcmp.eq.s32.totalorder %v3025_v9, %v3005_v4  ;;  %vm165_vm1 = vcmp.eq.s32.totalorder %v3034_v10, %v3005_v4  ;;  %vm44_vm4 = vcmp.eq.s32.totalorder %v3051_v12, %v2998_v2 }
   0x9   :  { %2691 = vmatpush3.bf16.msk.msra.mxu1 %vm2690_vm10, %v2972_v11  ;;  %2668 = vmatprep.subr.bf16.mxu0 %v2969_v1  ;;  %vm2669_vm11 = vmpackc.low %vm41_vm7, %vm40_vm5  ;;  %v3069_v14 = vadd.s32 64, %v3000_v3  ;;  %v3072_v15 = vadd.s32 72, %v3000_v3  ;;  %vm166_vm6 = vcmp.eq.s32.totalorder %v3051_v12, %v3005_v4  ;;  %v3080_v16 = vadd.s32 80, %v3000_v3 }
   0xa   :  { %2692 = vmatprep.subr.bf16.mxu1 %v2969_v1  ;;  %vm2693_vm12 = vmpackc.low %vm163_vm9, %vm162_vm8  ;;  %vm45_vm5 = vcmp.eq.s32.totalorder %v3054_v13, %v2998_v2  ;;  %vm167_vm7 = vcmp.eq.s32.totalorder %v3054_v13, %v3005_v4  ;;  %v3083_v17 = vadd.s32 88, %v3000_v3  ;;  %v3088_v18 = vadd.s32 96, %v3000_v3 }
   0xb   :  { %vm2672_vm2 = vmpackc.low %vm43_vm14, %vm42_vm13  ;;  %vm46_vm10 = vcmp.eq.s32.totalorder %v3069_v14, %v2998_v2  ;;  %v3096_v19 = vadd.s32 104, %v3000_v3  ;;  %vm169_vm13 = vcmp.eq.s32.totalorder %v3072_v15, %v3005_v4  ;;  %v3103_v20 = vadd.s32 112, %v3000_v3 }
   0xc   :  { %2670 = vmatpush3.bf16.msk.msra.mxu0 %vm2669_vm11, %v2972_v11  ;;  %vm2696_vm3 = vmpackc.low %vm165_vm1, %vm164_vm15  ;;  %vm47_vm11 = vcmp.eq.s32.totalorder %v3072_v15, %v2998_v2  ;;  %v3106_v21 = vadd.s32 120, %v3000_v3  ;;  %vm48_vm14 = vcmp.eq.s32.totalorder %v3080_v16, %v2998_v2  ;;  %vm49_vm15 = vcmp.eq.s32.totalorder %v3083_v17, %v2998_v2 }
   0xd   :  { %2694 = vmatpush3.bf16.msk.msra.mxu1 %vm2693_vm12, %v2972_v11  ;;  %2671 = vmatprep.subr.bf16.mxu0 %v2969_v1  ;;  %vm2675_vm8 = vmpackc.low %vm45_vm5, %vm44_vm4  ;;  %vm168_vm12 = vcmp.eq.s32.totalorder %v3069_v14, %v3005_v4  ;;  %vm170_vm1 = vcmp.eq.s32.totalorder %v3080_v16, %v3005_v4  ;;  %vm50_vm4 = vcmp.eq.s32.totalorder %v3088_v18, %v2998_v2  ;;  %v4863_v50 = vmov 0 }
   0xe   :  { %2695 = vmatprep.subr.bf16.mxu1 %v2969_v1  ;;  %vm2699_vm9 = vmpackc.low %vm167_vm7, %vm166_vm6  ;;  %vm172_vm5 = vcmp.eq.s32.totalorder %v3088_v18, %v3005_v4  ;;  %vm51_vm7 = vcmp.eq.s32.totalorder %v3096_v19, %v2998_v2  ;;  %vm175_vm0 = vcmp.eq.s32.totalorder %v3106_v21, %v3005_v4  ;;  %v4867_v51 = vmov 0 }
   0xf   :  { %vm3152_vm6 = vmpackc.low %vm169_vm13, %vm168_vm12  ;;  %vm431_vm12 = vcmp.eq.s32.totalorder %v3017_v7, %v3123_v23  ;;  %vm697_vm13 = vcmp.eq.s32.totalorder %v3000_v3, %v3167_v27  ;;  %v4871_v52 = vmov 0  ;;  %v4879_v54 = vmov 0 }
  0x10   :  { %2673 = vmatpush3.bf16.msk.msra.mxu0 %vm2672_vm2, %v2972_v11  ;;  %vm3130_vm2 = vmpackc.low %vm47_vm11, %vm46_vm10  ;;  %vm429_vm10 = vcmp.eq.s32.totalorder %v3000_v3, %v3123_v23  ;;  %vm4815_vm11 = vcmp.eq.s32.totalorder %v3106_v21, %v2998_v2  ;;  %v4887_v56 = vmov 0  ;;  %v4891_v57 = vmov 0 }
  0x11   :  { %2697 = vmatpush3.bf16.msk.msra.mxu1 %vm2696_vm3, %v2972_v11  ;;  %2674 = vmatprep.subr.bf16.mxu0 %v2969_v1  ;;  %vm171_vm3 = vcmp.eq.s32.totalorder %v3083_v17, %v3005_v4  ;;  %v4895_v59 = vmov 0  ;;  %v4903_v62 = vmov 0  ;;  %v4911_v0 = vmov 0 }
  0x12   :  { %2698 = vmatprep.subr.bf16.mxu1 %v2969_v1  ;;  %v4927_v26 = vmov 0  ;;  %v4935_v28 = vmov 0  ;;  %v4943_v29 = vmov 0  ;;  %v4951_v31 = vmov 0 }
  0x13   :  { %v4966_v35 = vmov 0  ;;  %v4970_v36 = vmov 0  ;;  %v4982_v40 = vmov 0  ;;  %v4986_v41 = vmov 0 }
  0x14   :  { %2676 = vmatpush3.bf16.msk.msra.mxu0 %vm2675_vm8, %v2972_v11  ;;  %vm173_vm8 = vcmp.eq.s32.totalorder %v3096_v19, %v3005_v4  ;;  %v4994_v47 = vmov 0  ;;  %v4998_v49 = vmov 0  ;;  %v5002_v53 = vmov 0 }
  0x15   :  { %2700 = vmatpush3.bf16.msk.msra.mxu1 %vm2699_vm9, %v2972_v11  ;;  %2677 = vmatprep.subr.bf16.mxu0 %v2969_v1  ;;  %v5006_v55 = vmov 0  ;;  %v5016_v43 = vmov 0  ;;  %v5021_v46 = vmov 0  ;;  %v5025_v61 = vmov 0 }
  0x16   :  { %2701 = vmatprep.subr.bf16.mxu1 %v2969_v1  ;;  %v5030_v63 = vmov 0  ;;  %v5043_v24 = vmov 0  ;;  %v5061_v30 = vmov 0 }
  0x18   :  { %2679 = vmatpush3.bf16.msk.msra.mxu0 %vm3130_vm2, %v2972_v11  ;;  %vm3200_vm2 = vmpackc.low %vm49_vm15, %vm48_vm14 }
  0x19   :  { %2703 = vmatpush3.bf16.msk.msra.mxu1 %vm3152_vm6, %v2972_v11  ;;  %2680 = vmatprep.subr.bf16.mxu0 %v2969_v1  ;;  %vm3221_vm14 = vmpackc.low %vm171_vm3, %vm170_vm1  ;;  %vm433_vm3 = vcmp.eq.s32.totalorder %v3025_v9, %v3123_v23  ;;  %vm575_vm6 = vcmp.eq.s32.totalorder %v3000_v3, %v3143_v25 }
  0x1a   :  { %2704 = vmatprep.subr.bf16.mxu1 %v2969_v1 }
  0x1c   :  { %2682 = vmatpush3.bf16.msk.msra.mxu0 %vm3200_vm2, %v2972_v11  ;;  %vm3270_vm2 = vmpackc.low %vm51_vm7, %vm50_vm4 }
  0x1d   :  { %2706 = vmatpush3.bf16.msk.msra.mxu1 %vm3221_vm14, %v2972_v11  ;;  %2683 = vmatprep.subr.bf16.mxu0 %v2969_v1  ;;  %vm3287_vm4 = vmpackc.low %vm173_vm8, %vm172_vm5  ;;  %vm4814_vm8 = vcmp.eq.s32.totalorder %v3103_v20, %v2998_v2  ;;  %vm4861_vm5 = vcmp.eq.s32.totalorder %v3017_v7, %v3167_v27  ;;  %v4915_v2 = vmov 0 }
  0x1e   :  { %2707 = vmatprep.subr.bf16.mxu1 %v2969_v1  ;;  %vm3319_vm15 = vmpackc.low %vm4815_vm11, %vm4814_vm8  ;;  %vm4818_vm8 = vcmp.eq.s32.totalorder %v3103_v20, %v3005_v4  ;;  %vm4829_vm11 = vcmp.eq.s32.totalorder %v3022_v8, %v3111_v22  ;;  %v4919_v4 = vmov 0 }
  0x1f   :  { %vm3344_vm1 = vmpackc.low %vm175_vm0, %vm4818_vm8  ;;  %vm4821_vm0 = vcmp.eq.s32.totalorder %v3000_v3, %v3111_v22  ;;  %vm4822_vm8 = vcmp.eq.s32.totalorder %v3012_v6, %v3111_v22 }
  0x20   :  { %2685 = vmatpush3.bf16.msk.msra.mxu0 %vm3270_vm2, %v2972_v11  ;;  %vm3366_vm14 = vmpackc.low %vm4822_vm8, %vm4821_vm0  ;;  %vm4825_vm0 = vcmp.eq.s32.totalorder %v3012_v6, %v3123_v23 }
  0x21   :  { %2709 = vmatpush3.bf16.msk.msra.mxu1 %vm3287_vm4, %v2972_v11  ;;  %2686 = vmatprep.subr.bf16.mxu0 %v2969_v1  ;;  %vm3383_vm8 = vmpackc.low %vm4825_vm0, %vm429_vm10  ;;  %vm4828_vm0 = vcmp.eq.s32.totalorder %v3017_v7, %v3111_v22  ;;  %vm4862_vm4 = vcmp.eq.s32.totalorder %v3022_v8, %v3167_v27 }
  0x22   :  { %2710 = vmatprep.subr.bf16.mxu1 %v2969_v1  ;;  %vm3405_vm7 = vmpackc.low %vm4829_vm11, %vm4828_vm0  ;;  %vm4832_vm0 = vcmp.eq.s32.totalorder %v3022_v8, %v3123_v23 }
  0x23   :  { %vm3435_vm10 = vmpackc.low %vm4832_vm0, %vm431_vm12  ;;  %vm4835_vm12 = vcmp.eq.s32.totalorder %v3025_v9, %v3111_v22  ;;  %vm4836_vm0 = vcmp.eq.s32.totalorder %v3034_v10, %v3111_v22 }
  0x24   :  { %2688 = vmatpush3.bf16.msk.msra.mxu0 %vm3319_vm15, %v2972_v11  ;;  %vm3457_vm11 = vmpackc.low %vm4836_vm0, %vm4835_vm12  ;;  %vm4839_vm12 = vcmp.eq.s32.totalorder %v3034_v10, %v3123_v23  ;;  %vm4857_vm15 = vcmp.eq.s32.totalorder %v3054_v13, %v3123_v23 }
  0x25   :  { %2712 = vmatpush3.bf16.msk.msra.mxu1 %vm3344_vm1, %v2972_v11  ;;  %2713 = vmatprep.subr.bf16.mxu0 %v2969_v1  ;;  %vm3474_vm0 = vmpackc.low %vm4839_vm12, %vm433_vm3  ;;  %vm4842_vm1 = vcmp.eq.s32.totalorder %v3012_v6, %v3143_v25  ;;  %vm4852_vm3 = vcmp.eq.s32.totalorder %v3017_v7, %v3143_v25 }
  0x26   :  { %2737 = vmatprep.subr.bf16.mxu1 %v2969_v1  ;;  %vm3499_vm9 = vmpackc.low %vm4842_vm1, %vm575_vm6  ;;  %vm4845_vm6 = vcmp.eq.s32.totalorder %v3012_v6, %v3167_v27 }
  0x27   :  { %2278 = vmatmul.mubr.f32.vlgmr.msra.gmra.mrb[0].mxu0 %v3427_v39  ;;  %vm3531_vm1 = vmpackc.low %vm4845_vm6, %vm697_vm13  ;;  %vm4848_vm13 = vcmp.eq.s32.totalorder %v3051_v12, %v3111_v22 }
  0x28   :  { %2313 = vmatmul.mubr.f32.vlgmr.msra.gmra.mrb[0].mxu1 %v3427_v39  ;;  %2715 = vmatpush3.bf16.msk.msra.mxu0 %vm3366_vm14, %v2972_v11  ;;  %vm4849_vm14 = vcmp.eq.s32.totalorder %v3054_v13, %v3111_v22 }
  0x29   :  { %2739 = vmatpush3.bf16.msk.msra.mxu1 %vm3383_vm8, %v2972_v11  ;;  %2716 = vmatprep.subr.bf16.mxu0 %v2969_v1  ;;  %vm3551_vm6 = vmpackc.low %vm4849_vm14, %vm4848_vm13  ;;  %vm4853_vm8 = vcmp.eq.s32.totalorder %v3022_v8, %v3143_v25  ;;  %vm4856_vm14 = vcmp.eq.s32.totalorder %v3051_v12, %v3123_v23  ;;  %vm4860_vm13 = vmmov 0  }
  0x2a   :  { %vm3563_vm12 = vmpackc.low %vm4853_vm8, %vm4852_vm3  ;;  %2740 = vmatprep.subr.bf16.mxu1 %v2969_v1  ;;  %2347 = vmatprep.mubr.msk.f32.mxu0 %vm4860_vm13, %v2971_v5 }
  0x2b   :  { %v4855_v48 = vsel %vm3563_vm12, 4294967295, %v4854_v48  ;;  %vm3578_vm2 = vmpackc.low %vm4857_vm15, %vm4856_vm14  ;;  %2382 = vmatprep.mubr.msk.f32.mxu1 %vm4860_vm13, %v2971_v5  ;;  %vm4877_vm15 = vcmp.eq.s32.totalorder %v3051_v12, %v3143_v25  ;;  %vm4910_vm13 = vcmp.eq.s32.totalorder %v3083_v17, %v3167_v27 }
  0x2c   :  { %vm3594_vm12 = vmpackc.low %vm4862_vm4, %vm4861_vm5  ;;  %vm4865_vm5 = vcmp.eq.s32.totalorder %v3025_v9, %v3143_v25  ;;  %vm4866_vm4 = vcmp.eq.s32.totalorder %v3034_v10, %v3143_v25  ;;  %2718 = vmatpush3.bf16.msk.msra.mxu0 %vm3405_vm7, %v2972_v11  ;;  %vm4878_vm7 = vcmp.eq.s32.totalorder %v3054_v13, %v3143_v25 }
  0x2d   :  { %v4864_v50 = vsel %vm3594_vm12, 4294967295, %v4863_v50  ;;  %vm3614_vm12 = vmpackc.low %vm4866_vm4, %vm4865_vm5  ;;  %vm4869_vm5 = vcmp.eq.s32.totalorder %v3025_v9, %v3167_v27  ;;  %vm4870_vm4 = vcmp.eq.s32.totalorder %v3034_v10, %v3167_v27  ;;  %2742 = vmatpush3.bf16.msk.msra.mxu1 %vm3435_vm10, %v2972_v11  ;;  %2719 = vmatprep.subr.bf16.mxu0 %v2969_v1 }
  0x2e   :  { %v4868_v51 = vsel %vm3614_vm12, 4294967295, %v4867_v51  ;;  %vm3635_vm14 = vmpackc.low %vm4870_vm4, %vm4869_vm5  ;;  %vm4873_vm5 = vcmp.eq.s32.totalorder %v3069_v14, %v3111_v22  ;;  %vm4874_vm4 = vcmp.eq.s32.totalorder %v3072_v15, %v3111_v22  ;;  %2743 = vmatprep.subr.bf16.mxu1 %v2969_v1 }
  0x2f   :  { %v4872_v52 = vsel %vm3635_vm14, 4294967295, %v4871_v52  ;;  %vm3657_vm3 = vmpackc.low %vm4874_vm4, %vm4873_vm5  ;;  %vm4881_vm4 = vcmp.eq.s32.totalorder %v3069_v14, %v3123_v23  ;;  %vm4885_vm5 = vcmp.eq.s32.totalorder %v3051_v12, %v3167_v27  ;;  %vm4902_vm14 = vcmp.eq.s32.totalorder %v3083_v17, %v3143_v25 }
  0x30   :  { %vm3667_vm8 = vmpackc.low %vm4878_vm7, %vm4877_vm15  ;;  %vm4882_vm15 = vcmp.eq.s32.totalorder %v3072_v15, %v3123_v23  ;;  %2721 = vmatpush3.bf16.msk.msra.mxu0 %vm3457_vm11, %v2972_v11  ;;  %vm4901_vm11 = vcmp.eq.s32.totalorder %v3080_v16, %v3143_v25 }
  0x31   :  { %v4880_v54 = vsel %vm3667_vm8, 4294967295, %v4879_v54  ;;  %vm3684_vm7 = vmpackc.low %vm4882_vm15, %vm4881_vm4  ;;  %vm4886_vm8 = vcmp.eq.s32.totalorder %v3054_v13, %v3167_v27  ;;  %2745 = vmatpush3.bf16.msk.msra.mxu1 %vm3474_vm0, %v2972_v11  ;;  %2722 = vmatprep.subr.bf16.mxu0 %v2969_v1  ;;  %vm4909_vm0 = vcmp.eq.s32.totalorder %v3080_v16, %v3167_v27 }
  0x32   :  { %vm3698_vm12 = vmpackc.low %vm4886_vm8, %vm4885_vm5  ;;  %vm4889_vm8 = vcmp.eq.s32.totalorder %v3069_v14, %v3143_v25  ;;  %vm4890_vm5 = vcmp.eq.s32.totalorder %v3072_v15, %v3143_v25  ;;  %2746 = vmatprep.subr.bf16.mxu1 %v2969_v1 }
  0x33   :  { %v4888_v56 = vsel %vm3698_vm12, 4294967295, %v4887_v56  ;;  %vm3718_vm12 = vmpackc.low %vm4890_vm5, %vm4889_vm8  ;;  %vm4893_vm8 = vcmp.eq.s32.totalorder %v3069_v14, %v3167_v27  ;;  %vm4894_vm5 = vcmp.eq.s32.totalorder %v3072_v15, %v3167_v27 }
  0x34   :  { %v4892_v57 = vsel %vm3718_vm12, 4294967295, %v4891_v57  ;;  %vm3744_vm10 = vmpackc.low %vm4894_vm5, %vm4893_vm8  ;;  %vm4897_vm8 = vcmp.eq.s32.totalorder %v3080_v16, %v3111_v22  ;;  %vm4898_vm5 = vcmp.eq.s32.totalorder %v3083_v17, %v3111_v22  ;;  %vm4913_vm12 = vcmp.eq.s32.totalorder %v3088_v18, %v3143_v25  ;;  %2724 = vmatpush3.bf16.msk.msra.mxu0 %vm3551_vm6, %v2972_v11 }
  0x35   :  { %v4896_v59 = vsel %vm3744_vm10, 4294967295, %v4895_v59  ;;  %vm3771_vm15 = vmpackc.low %vm4898_vm5, %vm4897_vm8  ;;  %vm4905_vm5 = vcmp.eq.s32.totalorder %v3080_v16, %v3123_v23  ;;  %2748 = vmatpush3.bf16.msk.msra.mxu1 %vm3578_vm2, %v2972_v11  ;;  %2725 = vmatprep.subr.bf16.mxu0 %v2969_v1  ;;  %vm4925_vm10 = vcmp.eq.s32.totalorder %v3103_v20, %v3143_v25  ;;  %vm4926_vm6 = vcmp.eq.s32.totalorder %v3106_v21, %v3143_v25 }
  0x36   :  { %vm3781_vm4 = vmpackc.low %vm4902_vm14, %vm4901_vm11  ;;  %vm4906_vm14 = vcmp.eq.s32.totalorder %v3083_v17, %v3123_v23  ;;  %2749 = vmatprep.subr.bf16.mxu1 %v2969_v1  ;;  %vm4933_vm2 = vcmp.eq.s32.totalorder %v3103_v20, %v3167_v27 }
  0x37   :  { %v4904_v62 = vsel %vm3781_vm4, 4294967295, %v4903_v62  ;;  %vm3798_vm11 = vmpackc.low %vm4906_vm14, %vm4905_vm5 }
  0x38   :  { %vm3808_vm4 = vmpackc.low %vm4910_vm13, %vm4909_vm0  ;;  %vm4914_vm13 = vcmp.eq.s32.totalorder %v3096_v19, %v3143_v25  ;;  %2727 = vmatpush3.bf16.msk.msra.mxu0 %vm3657_vm3, %v2972_v11  ;;  %vm4946_vm3 = vcmp.eq.s32.totalorder %v3106_v21, %v3111_v22  ;;  %v5048_v25 = vmov 0 }
  0x39   :  { %v4912_v0 = vsel %vm3808_vm4, 4294967295, %v4911_v0  ;;  %vm3826_vm0 = vmpackc.low %vm4914_vm13, %vm4913_vm12  ;;  %vm4917_vm12 = vcmp.eq.s32.totalorder %v3088_v18, %v3167_v27  ;;  %vm4918_vm13 = vcmp.eq.s32.totalorder %v3096_v19, %v3167_v27  ;;  %vm444_vm4 = vcmp.eq.s32.totalorder %v3106_v21, %v3123_v23  ;;  %2751 = vmatpush3.bf16.msk.msra.mxu1 %vm3684_vm7, %v2972_v11  ;;  %2728 = vmatprep.subr.bf16.mxu0 %v2969_v1 }
  0x3a   :  { %v4916_v2 = vsel %vm3826_vm0, 4294967295, %v4915_v2  ;;  %vm3847_vm8 = vmpackc.low %vm4918_vm13, %vm4917_vm12  ;;  %vm4921_vm12 = vcmp.eq.s32.totalorder %v3088_v18, %v3111_v22  ;;  %vm4922_vm13 = vcmp.eq.s32.totalorder %v3096_v19, %v3111_v22  ;;  %2752 = vmatprep.subr.bf16.mxu1 %v2969_v1  ;;  %vm4953_vm7 = vcmp.eq.s32.totalorder %v3103_v20, %v3123_v23 }
  0x3b   :  { %v4920_v4 = vsel %vm3847_vm8, 4294967295, %v4919_v4  ;;  %vm3869_vm5 = vmpackc.low %vm4922_vm13, %vm4921_vm12  ;;  %vm4929_vm13 = vcmp.eq.s32.totalorder %v3088_v18, %v3123_v23  ;;  %vm4934_vm8 = vcmp.eq.s32.totalorder %v3106_v21, %v3167_v27  ;;  %v4939_v27 = vmov 0 }
  0x3c   :  { %vm3879_vm14 = vmpackc.low %vm4926_vm6, %vm4925_vm10  ;;  %vm4930_vm10 = vcmp.eq.s32.totalorder %v3096_v19, %v3123_v23  ;;  %vm4941_vm12 = vcmp.eq.s32.totalorder %v3000_v3, %v3311_v33  ;;  %2730 = vmatpush3.bf16.msk.msra.mxu0 %vm3771_vm15, %v2972_v11  ;;  %vm4969_vm15 = vcmp.eq.s32.totalorder %v3054_v13, %v3306_v32 }
  0x3d   :  { %v4928_v26 = vsel %vm3879_vm14, 4294967295, %v4927_v26  ;;  %vm3896_vm6 = vmpackc.low %vm4930_vm10, %vm4929_vm13  ;;  %vm4945_vm10 = vcmp.eq.s32.totalorder %v3103_v20, %v3111_v22  ;;  %2754 = vmatpush3.bf16.msk.msra.mxu1 %vm3798_vm11, %v2972_v11  ;;  %2731 = vmatprep.subr.bf16.mxu0 %v2969_v1  ;;  %vm4973_vm11 = vcmp.eq.s32.totalorder %v3054_v13, %v3311_v33  ;;  %v5066_v22 = vmov 0 }
  0x3e   :  { %vm3906_vm14 = vmpackc.low %vm4934_vm8, %vm4933_vm2  ;;  %vm4937_vm8 = vcmp.eq.s32.totalorder %v3000_v3, %v3306_v32  ;;  %vm4938_vm2 = vcmp.eq.s32.totalorder %v3012_v6, %v3306_v32  ;;  %2755 = vmatprep.subr.bf16.mxu1 %v2969_v1 }
  0x3f   :  { %v4936_v28 = vsel %vm3906_vm14, 4294967295, %v4935_v28  ;;  %vm3926_vm14 = vmpackc.low %vm4938_vm2, %vm4937_vm8  ;;  %vm4942_vm8 = vcmp.eq.s32.totalorder %v3012_v6, %v3311_v33 }
  0x40   :  { %v4940_v27 = vsel %vm3926_vm14, 4294967295, %v4939_v27  ;;  %vm3945_vm2 = vmpackc.low %vm4942_vm8, %vm4941_vm12  ;;  %vm4949_vm12 = vcmp.eq.s32.totalorder %v3017_v7, %v3306_v32  ;;  %vm4950_vm8 = vcmp.eq.s32.totalorder %v3022_v8, %v3306_v32  ;;  %2733 = vmatpush3.bf16.msk.msra.mxu0 %vm3869_vm5, %v2972_v11  ;;  %vm4985_vm5 = vcmp.eq.s32.totalorder %v3083_v17, %v3306_v32 }
  0x41   :  { %v4944_v29 = vsel %vm3945_vm2, 4294967295, %v4943_v29  ;;  %vm3959_vm13 = vmpackc.low %vm4946_vm3, %vm4945_vm10  ;;  %vm4956_vm10 = vcmp.eq.s32.totalorder %v3017_v7, %v3311_v33  ;;  %vm4957_vm3 = vcmp.eq.s32.totalorder %v3022_v8, %v3311_v33  ;;  %2757 = vmatpush3.bf16.msk.msra.mxu1 %vm3896_vm6, %v2972_v11  ;;  %2734 = vmatprep.subr.bf16.mxu0 %v2969_v1  ;;  %vm4989_vm6 = vcmp.eq.s32.totalorder %v3083_v17, %v3311_v33 }
  0x42   :  { %vm3969_vm0 = vmpackc.low %vm4950_vm8, %vm4949_vm12  ;;  %vm4964_vm8 = vcmp.eq.s32.totalorder %v3025_v9, %v3311_v33  ;;  %vm4965_vm12 = vcmp.eq.s32.totalorder %v3034_v10, %v3311_v33  ;;  %2758 = vmatprep.subr.bf16.mxu1 %v2969_v1 }
  0x43   :  { %v4952_v31 = vsel %vm3969_vm0, 4294967295, %v4951_v31  ;;  %vm3977_vm2 = vmpackc.low %vm444_vm4, %vm4953_vm7  ;;  %vm4960_vm4 = vcmp.eq.s32.totalorder %v3025_v9, %v3306_v32  ;;  %vm4961_vm7 = vcmp.eq.s32.totalorder %v3034_v10, %v3306_v32 }
  0x44   :  { %vm3987_vm14 = vmpackc.low %vm4957_vm3, %vm4956_vm10  ;;  %vm4981_vm10 = vcmp.eq.s32.totalorder %v3072_v15, %v3311_v33  ;;  %2736 = vmatpush3.bf16.msk.msra.mxu0 %vm3959_vm13, %v2972_v11  ;;  %vm5000_vm13 = vcmp.eq.s32.totalorder %v3103_v20, %v3306_v32 }
  0x45   :  { %vm4001_vm0 = vmpackc.low %vm4961_vm7, %vm4960_vm4  ;;  %vm4968_vm7 = vcmp.eq.s32.totalorder %v3051_v12, %v3306_v32  ;;  %2760 = vmatpush3.bf16.msk.msra.mxu1 %vm3977_vm2, %v2972_v11  ;;  %2761 = vmatprep.subr.bf16.mxu0 %v2969_v1  ;;  %vm5004_vm2 = vcmp.eq.s32.totalorder %v3103_v20, %v3311_v33 }
  0x46   :  { %vm4018_vm4 = vmpackc.low %vm4965_vm12, %vm4964_vm8  ;;  %vm4972_vm12 = vcmp.eq.s32.totalorder %v3051_v12, %v3311_v33  ;;  %2785 = vmatprep.subr.bf16.mxu1 %v2969_v1 }
  0x47   :  { %v4967_v35 = vsel %vm4018_vm4, 4294967295, %v4966_v35  ;;  %vm4032_vm3 = vmpackc.low %vm4969_vm15, %vm4968_vm7  ;;  %vm4976_vm15 = vcmp.eq.s32.totalorder %v3069_v14, %v3306_v32  ;;  %vm4980_vm7 = vcmp.eq.s32.totalorder %v3069_v14, %v3311_v33  ;;  %2348 = vmatmul.mubr.f32.vlgmr.msra.gmra.mrb[2].mxu0 %v3427_v39 }
  0x48   :  { %v4971_v36 = vsel %vm4032_vm3, 4294967295, %v4970_v36  ;;  %vm4043_vm8 = vmpackc.low %vm4973_vm11, %vm4972_vm12  ;;  %vm4977_vm3 = vcmp.eq.s32.totalorder %v3072_v15, %v3306_v32  ;;  %vm4997_vm12 = vcmp.eq.s32.totalorder %v3096_v19, %v3311_v33  ;;  %2383 = vmatmul.mubr.f32.vlgmr.msra.gmra.mrb[2].mxu1 %v3427_v39  ;;  %2763 = vmatpush3.bf16.msk.msra.mxu0 %vm3499_vm9, %v2972_v11 }
  0x49   :  { %vm4057_vm4 = vmpackc.low %vm4977_vm3, %vm4976_vm15  ;;  %vm4984_vm15 = vcmp.eq.s32.totalorder %v3080_v16, %v3306_v32  ;;  %2787 = vmatpush3.bf16.msk.msra.mxu1 %vm3531_vm1, %v2972_v11  ;;  %2764 = vmatprep.subr.bf16.mxu0 %v2969_v1  ;;  %vm5019_vm1 = vcmp.eq.s32.totalorder %v3017_v7, %v3519_v45 }
  0x4a   :  { %vm4074_vm3 = vmpackc.low %vm4981_vm10, %vm4980_vm7  ;;  %vm4988_vm10 = vcmp.eq.s32.totalorder %v3080_v16, %v3311_v33  ;;  %2788 = vmatprep.subr.bf16.mxu1 %v2969_v1 }
  0x4b   :  { %v4983_v40 = vsel %vm4074_vm3, 4294967295, %v4982_v40  ;;  %vm4088_vm11 = vmpackc.low %vm4985_vm5, %vm4984_vm15  ;;  %vm4992_vm5 = vcmp.eq.s32.totalorder %v3088_v18, %v3306_v32  ;;  %vm4996_vm15 = vcmp.eq.s32.totalorder %v3088_v18, %v3311_v33 }
  0x4c   :  { %v4987_v41 = vsel %vm4088_vm11, 4294967295, %v4986_v41  ;;  %vm4099_vm7 = vmpackc.low %vm4989_vm6, %vm4988_vm10  ;;  %vm4993_vm11 = vcmp.eq.s32.totalorder %v3096_v19, %v3306_v32  ;;  %vm5001_vm6 = vcmp.eq.s32.totalorder %v3106_v21, %v3306_v32  ;;  %v5009_v32 = vmov 0 }
  0x4d   :  { %vm4113_vm3 = vmpackc.low %vm4993_vm11, %vm4992_vm5  ;;  %vm1111_vm5 = vcmp.eq.s32.totalorder %v3000_v3, %v3514_v44 }
  0x4e   :  { %v4995_v47 = vsel %vm4113_vm3, 4294967295, %v4994_v47  ;;  %vm4130_vm11 = vmpackc.low %vm4997_vm12, %vm4996_vm15  ;;  %vm1233_vm12 = vcmp.eq.s32.totalorder %v3000_v3, %v3519_v45  ;;  %vm5005_vm15 = vcmp.eq.s32.totalorder %v3106_v21, %v3311_v33  ;;  %v5012_v33 = vmov 0 }
  0x4f   :  { %v4999_v49 = vsel %vm4130_vm11, 4294967295, %v4998_v49  ;;  %vm4146_vm10 = vmpackc.low %vm5001_vm6, %vm5000_vm13  ;;  %vm5008_vm6 = vcmp.eq.s32.totalorder %v3012_v6, %v3514_v44 }
  0x50   :  { %v5003_v53 = vsel %vm4146_vm10, 4294967295, %v5002_v53  ;;  %vm4159_vm11 = vmpackc.low %vm5005_vm15, %vm5004_vm2  ;;  %vm5011_vm2 = vcmp.eq.s32.totalorder %v3012_v6, %v3519_v45  ;;  %vm5081_vm10 = vcmp.eq.s32.totalorder %v3012_v6, %v3759_v60 }
  0x51   :  { %v5007_v55 = vsel %vm4159_vm11, 4294967295, %v5006_v55  ;;  %vm4167_vm13 = vmpackc.low %vm5008_vm6, %vm1111_vm5  ;;  %vm5014_vm5 = vcmp.eq.s32.totalorder %v3017_v7, %v3514_v44  ;;  %vm5015_vm6 = vcmp.eq.s32.totalorder %v3022_v8, %v3514_v44 }
  0x52   :  { %v5010_v32 = vsel %vm4167_vm13, 4294967295, %v5009_v32  ;;  %vm4178_vm15 = vmpackc.low %vm5011_vm2, %vm1233_vm12  ;;  %vm5018_vm12 = vmmov 0   ;;  %vm5020_vm2 = vcmp.eq.s32.totalorder %v3022_v8, %v3519_v45  ;;  %vm5027_vm13 = vnez %v4855_v48 }
  0x53   :  { %v5013_v33 = vsel %vm4178_vm15, 4294967295, %v5012_v33  ;;  %vm4192_vm9 = vmpackc.low %vm5015_vm6, %vm5014_vm5  ;;  %2417 = vmatprep.mubr.msk.f32.mxu0 %vm5018_vm12, %v2971_v5  ;;  %2452 = vmatprep.mubr.msk.f32.mxu1 %vm5018_vm12, %v2971_v5  ;;  %vm5023_vm5 = vcmp.eq.s32.totalorder %v3025_v9, %v3514_v44  ;;  %vm5024_vm6 = vcmp.eq.s32.totalorder %v3034_v10, %v3514_v44  ;;  %v5035_v48 = vmov 0 }
  0x54   :  { %v5017_v43 = vsel %vm4192_vm9, 4294967295, %v5016_v43  ;;  %vm4205_vm15 = vmpackc.low %vm5020_vm2, %vm5019_vm1  ;;  %2766 = vmatpush3.bf16.msk.msra.mxu0 %vm5027_vm13, %v2972_v11  ;;  %vm5028_vm1 = vcmp.eq.s32.totalorder %v3025_v9, %v3519_v45  ;;  %vm5029_vm2 = vcmp.eq.s32.totalorder %v3034_v10, %v3519_v45  ;;  %vm5034_vm13 = vcmp.eq.s32.totalorder %v3054_v13, %v3514_v44 }
  0x55   :  { %v5022_v46 = vsel %vm4205_vm15, 4294967295, %v5021_v46  ;;  %vm4217_vm9 = vmpackc.low %vm5024_vm6, %vm5023_vm5  ;;  %vm5032_vm5 = vnez %v4864_v50  ;;  %2767 = vmatprep.subr.bf16.mxu0 %v2969_v1  ;;  %vm5033_vm6 = vcmp.eq.s32.totalorder %v3051_v12, %v3514_v44  ;;  %v5039_v50 = vmov 0 }
  0x56   :  { %v5026_v61 = vsel %vm4217_vm9, 4294967295, %v5025_v61  ;;  %vm4230_vm15 = vmpackc.low %vm5029_vm2, %vm5028_vm1  ;;  %2790 = vmatpush3.bf16.msk.msra.mxu1 %vm5032_vm5, %v2972_v11  ;;  %vm5037_vm1 = vcmp.eq.s32.totalorder %v3051_v12, %v3519_v45  ;;  %vm5038_vm2 = vcmp.eq.s32.totalorder %v3054_v13, %v3519_v45 }
  0x57   :  { %v5031_v63 = vsel %vm4230_vm15, 4294967295, %v5030_v63  ;;  %vm4244_vm9 = vmpackc.low %vm5034_vm13, %vm5033_vm6  ;;  %2791 = vmatprep.subr.bf16.mxu1 %v2969_v1  ;;  %vm5041_vm15 = vcmp.eq.s32.totalorder %v3069_v14, %v3514_v44  ;;  %vm5042_vm6 = vcmp.eq.s32.totalorder %v3072_v15, %v3514_v44 }
  0x58   :  { %v5036_v48 = vsel %vm4244_vm9, 4294967295, %v5035_v48  ;;  %vm4255_vm5 = vmpackc.low %vm5038_vm2, %vm5037_vm1  ;;  %vm5045_vm9 = vnez %v4868_v51  ;;  %vm5046_vm1 = vcmp.eq.s32.totalorder %v3069_v14, %v3519_v45  ;;  %vm5047_vm2 = vcmp.eq.s32.totalorder %v3072_v15, %v3519_v45 }
  0x59   :  { %v5040_v50 = vsel %vm4255_vm5, 4294967295, %v5039_v50  ;;  %vm4265_vm13 = vmpackc.low %vm5042_vm6, %vm5041_vm15  ;;  %2769 = vmatpush3.bf16.msk.msra.mxu0 %vm5045_vm9, %v2972_v11  ;;  %vm5050_vm15 = vnez %v4872_v52  ;;  %vm5051_vm6 = vcmp.eq.s32.totalorder %v3080_v16, %v3514_v44  ;;  %vm5052_vm9 = vcmp.eq.s32.totalorder %v3083_v17, %v3514_v44 }
  0x5a   :  { %v5044_v24 = vsel %vm4265_vm13, 4294967295, %v5043_v24  ;;  %vm4278_vm5 = vmpackc.low %vm5047_vm2, %vm5046_vm1  ;;  %2793 = vmatpush3.bf16.msk.msra.mxu1 %vm5050_vm15, %v2972_v11  ;;  %2770 = vmatprep.subr.bf16.mxu0 %v2969_v1  ;;  %v5053_v51 = vmov 0  ;;  %vm5055_vm1 = vcmp.eq.s32.totalorder %v3080_v16, %v3519_v45  ;;  %vm5056_vm2 = vcmp.eq.s32.totalorder %v3083_v17, %v3519_v45 }
  0x5b   :  { %v5049_v25 = vsel %vm4278_vm5, 4294967295, %v5048_v25  ;;  %vm4292_vm13 = vmpackc.low %vm5052_vm9, %vm5051_vm6  ;;  %2794 = vmatprep.subr.bf16.mxu1 %v2969_v1  ;;  %v5057_v52 = vmov 0  ;;  %vm5059_vm5 = vcmp.eq.s32.totalorder %v3088_v18, %v3514_v44  ;;  %vm5060_vm6 = vcmp.eq.s32.totalorder %v3096_v19, %v3514_v44 }
  0x5c   :  { %v5054_v51 = vsel %vm4292_vm13, 4294967295, %v5053_v51  ;;  %vm4303_vm15 = vmpackc.low %vm5056_vm2, %vm5055_vm1  ;;  %vm5063_vm13 = vnez %v4880_v54  ;;  %vm5064_vm1 = vcmp.eq.s32.totalorder %v3088_v18, %v3519_v45  ;;  %vm5065_vm2 = vcmp.eq.s32.totalorder %v3096_v19, %v3519_v45 }
  0x5d   :  { %v5058_v52 = vsel %vm4303_vm15, 4294967295, %v5057_v52  ;;  %vm4313_vm9 = vmpackc.low %vm5060_vm6, %vm5059_vm5  ;;  %2772 = vmatpush3.bf16.msk.msra.mxu0 %vm5063_vm13, %v2972_v11  ;;  %vm1379_vm5 = vcmp.eq.s32.totalorder %v3000_v3, %v3733_v58  ;;  %vm5068_vm6 = vnez %v4888_v56  ;;  %vm5069_vm13 = vcmp.eq.s32.totalorder %v3103_v20, %v3514_v44 }
  0x5e   :  { %v5062_v30 = vsel %vm4313_vm9, 4294967295, %v5061_v30  ;;  %vm4326_vm15 = vmpackc.low %vm5065_vm2, %vm5064_vm1  ;;  %2796 = vmatpush3.bf16.msk.msra.mxu1 %vm5068_vm6, %v2972_v11  ;;  %2773 = vmatprep.subr.bf16.mxu0 %v2969_v1  ;;  %vm5070_vm9 = vcmp.eq.s32.totalorder %v3106_v21, %v3514_v44  ;;  %v5071_v54 = vmov 0  ;;  %vm1501_vm1 = vcmp.eq.s32.totalorder %v3000_v3, %v3759_v60 }
  0x5f   :  { %v5067_v22 = vsel %vm4326_vm15, 4294967295, %v5066_v22  ;;  %vm4342_vm11 = vmpackc.low %vm5070_vm9, %vm5069_vm13  ;;  %2797 = vmatprep.subr.bf16.mxu1 %v2969_v1  ;;  %vm5073_vm2 = vcmp.eq.s32.totalorder %v3103_v20, %v3519_v45  ;;  %vm5074_vm6 = vcmp.eq.s32.totalorder %v3106_v21, %v3519_v45  ;;  %vm5077_vm9 = vcmp.eq.s32.totalorder %v3012_v6, %v3733_v58 }
  0x60   :  { %v5072_v54 = vsel %vm4342_vm11, 4294967295, %v5071_v54  ;;  %vm4355_vm15 = vmpackc.low %vm5074_vm6, %vm5073_vm2  ;;  %vm5080_vm11 = vnez %v4892_v57  ;;  %vm5084_vm2 = vnez %v4896_v59  ;;  %vm5086_vm6 = vcmp.eq.s32.totalorder %v3022_v8, %v3733_v58 }
  0x61   :  { %vm4362_vm13 = vmpackc.low %vm5077_vm9, %vm1379_vm5  ;;  %2775 = vmatpush3.bf16.msk.msra.mxu0 %vm5080_vm11, %v2972_v11  ;;  %vm5085_vm5 = vcmp.eq.s32.totalorder %v3017_v7, %v3733_v58  ;;  %v5087_v57 = vmov 0  ;;  %v5091_v6 = vmov 0  ;;  %v5095_v59 = vmov 0 }
  0x62   :  { %vm4372_vm3 = vmpackc.low %vm5081_vm10, %vm1501_vm1  ;;  %2799 = vmatpush3.bf16.msk.msra.mxu1 %vm5084_vm2, %v2972_v11  ;;  %2776 = vmatprep.subr.bf16.mxu0 %v2969_v1  ;;  %vm5089_vm10 = vcmp.eq.s32.totalorder %v3017_v7, %v3759_v60  ;;  %vm5090_vm1 = vcmp.eq.s32.totalorder %v3022_v8, %v3759_v60  ;;  %vm5093_vm2 = vcmp.eq.s32.totalorder %v3025_v9, %v3733_v58  ;;  %v5100_v7 = vmov 0 }
  0x63   :  { %vm4386_vm11 = vmpackc.low %vm5086_vm6, %vm5085_vm5  ;;  %2800 = vmatprep.subr.bf16.mxu1 %v2969_v1  ;;  %vm5094_vm5 = vcmp.eq.s32.totalorder %v3034_v10, %v3733_v58  ;;  %v5105_v8 = vmov 0 }
  0x64   :  { %v5088_v57 = vsel %vm4386_vm11, 4294967295, %v5087_v57  ;;  %vm4397_vm9 = vmpackc.low %vm5090_vm1, %vm5089_vm10  ;;  %vm5097_vm11 = vnez %v4904_v62  ;;  %vm5098_vm10 = vcmp.eq.s32.totalorder %v3025_v9, %v3759_v60  ;;  %vm5099_vm1 = vcmp.eq.s32.totalorder %v3034_v10, %v3759_v60 }
  0x65   :  { %v5092_v6 = vsel %vm4397_vm9, 4294967295, %v5091_v6  ;;  %vm4407_vm6 = vmpackc.low %vm5094_vm5, %vm5093_vm2  ;;  %2778 = vmatpush3.bf16.msk.msra.mxu0 %vm5097_vm11, %v2972_v11  ;;  %vm5102_vm2 = vnez %v4912_v0  ;;  %vm5103_vm5 = vcmp.eq.s32.totalorder %v3051_v12, %v3733_v58  ;;  %vm5104_vm11 = vcmp.eq.s32.totalorder %v3054_v13, %v3733_v58 }
  0x66   :  { %v5096_v59 = vsel %vm4407_vm6, 4294967295, %v5095_v59  ;;  %vm4420_vm9 = vmpackc.low %vm5099_vm1, %vm5098_vm10  ;;  %2802 = vmatpush3.bf16.msk.msra.mxu1 %vm5102_vm2, %v2972_v11  ;;  %2779 = vmatprep.subr.bf16.mxu0 %v2969_v1  ;;  %vm5107_vm10 = vcmp.eq.s32.totalorder %v3051_v12, %v3759_v60  ;;  %vm5108_vm1 = vcmp.eq.s32.totalorder %v3054_v13, %v3759_v60  ;;  %v5109_v9 = vmov 0 }
  0x67   :  { %v5101_v7 = vsel %vm4420_vm9, 4294967295, %v5100_v7  ;;  %vm4434_vm6 = vmpackc.low %vm5104_vm11, %vm5103_vm5  ;;  %2803 = vmatprep.subr.bf16.mxu1 %v2969_v1  ;;  %vm5111_vm9 = vcmp.eq.s32.totalorder %v3069_v14, %v3733_v58  ;;  %vm5112_vm5 = vcmp.eq.s32.totalorder %v3072_v15, %v3733_v58  ;;  %v5113_v10 = vmov 0 }
  0x68   :  { %v5106_v8 = vsel %vm4434_vm6, 4294967295, %v5105_v8  ;;  %vm4445_vm2 = vmpackc.low %vm5108_vm1, %vm5107_vm10  ;;  %vm5115_vm6 = vnez %v4916_v2  ;;  %vm5116_vm10 = vcmp.eq.s32.totalorder %v3069_v14, %v3759_v60  ;;  %vm5117_vm1 = vcmp.eq.s32.totalorder %v3072_v15, %v3759_v60 }
  0x69   :  { %v5110_v9 = vsel %vm4445_vm2, 4294967295, %v5109_v9  ;;  %vm4455_vm11 = vmpackc.low %vm5112_vm5, %vm5111_vm9  ;;  %2781 = vmatpush3.bf16.msk.msra.mxu0 %vm5115_vm6, %v2972_v11  ;;  %v5118_v12 = vmov 0  ;;  %vm5120_vm9 = vnez %v4920_v4  ;;  %vm5121_vm5 = vcmp.eq.s32.totalorder %v3080_v16, %v3733_v58 }
  0x6a   :  { %v5114_v10 = vsel %vm4455_vm11, 4294967295, %v5113_v10  ;;  %vm4468_vm2 = vmpackc.low %vm5117_vm1, %vm5116_vm10  ;;  %2805 = vmatpush3.bf16.msk.msra.mxu1 %vm5120_vm9, %v2972_v11  ;;  %2782 = vmatprep.subr.bf16.mxu0 %v2969_v1  ;;  %vm5122_vm6 = vcmp.eq.s32.totalorder %v3083_v17, %v3733_v58  ;;  %v5123_v13 = vmov 0  ;;  %vm5125_vm10 = vcmp.eq.s32.totalorder %v3080_v16, %v3759_v60 }
  0x6b   :  { %v5119_v12 = vsel %vm4468_vm2, 4294967295, %v5118_v12  ;;  %vm4482_vm11 = vmpackc.low %vm5122_vm6, %vm5121_vm5  ;;  %2806 = vmatprep.subr.bf16.mxu1 %v2969_v1  ;;  %vm5126_vm1 = vcmp.eq.s32.totalorder %v3083_v17, %v3759_v60  ;;  %v5127_v14 = vmov 0  ;;  %vm5129_vm2 = vcmp.eq.s32.totalorder %v3088_v18, %v3733_v58 }
  0x6c   :  { %v5124_v13 = vsel %vm4482_vm11, 4294967295, %v5123_v13  ;;  %vm4493_vm9 = vmpackc.low %vm5126_vm1, %vm5125_vm10  ;;  %vm5130_vm5 = vcmp.eq.s32.totalorder %v3096_v19, %v3733_v58  ;;  %v5131_v15 = vmov 0  ;;  %vm5133_vm11 = vnez %v4928_v26 }
  0x6d   :  { %v5128_v14 = vsel %vm4493_vm9, 4294967295, %v5127_v14  ;;  %vm4503_vm6 = vmpackc.low %vm5130_vm5, %vm5129_vm2  ;;  %2784 = vmatpush3.bf16.msk.msra.mxu0 %vm5133_vm11, %v2972_v11  ;;  %vm5134_vm10 = vcmp.eq.s32.totalorder %v3088_v18, %v3759_v60  ;;  %vm5135_vm1 = vcmp.eq.s32.totalorder %v3096_v19, %v3759_v60  ;;  %vm5138_vm2 = vnez %v4936_v28 }
  0x6e   :  { %v5132_v15 = vsel %vm4503_vm6, 4294967295, %v5131_v15  ;;  %vm4516_vm9 = vmpackc.low %vm5135_vm1, %vm5134_vm10  ;;  %2808 = vmatpush3.bf16.msk.msra.mxu1 %vm5138_vm2, %v2972_v11  ;;  %2809 = vmatprep.subr.bf16.mxu0 %v2969_v1  ;;  %vm5139_vm5 = vcmp.eq.s32.totalorder %v3103_v20, %v3733_v58  ;;  %vm5140_vm11 = vcmp.eq.s32.totalorder %v3106_v21, %v3733_v58  ;;  %vm5143_vm10 = vcmp.eq.s32.totalorder %v3103_v20, %v3759_v60 }
  0x6f   :  { %vm4530_vm6 = vmpackc.low %vm5140_vm11, %vm5139_vm5  ;;  %2833 = vmatprep.subr.bf16.mxu1 %v2969_v1  ;;  %vm5144_vm1 = vcmp.eq.s32.totalorder %v3106_v21, %v3759_v60  ;;  %vm5147_vm5 = vnez %v4940_v27  ;;  %vm5148_vm11 = vnez %v4944_v29  ;;  %v4756_v28 = vsub.s32 0, %v3000_v3 }
  0x70   :  { %vm4541_vm2 = vmpackc.low %vm5144_vm1, %vm5143_vm10  ;;  %2418 = vmatmul.mubr.f32.vlgmr.msra.gmra.mrb[4].mxu0 %v3427_v39  ;;  %vm5149_vm10 = vnez %v4952_v31  ;;  %vm5150_vm1 = vnez %v4967_v35 }
  0x71   :  { %2453 = vmatmul.mubr.f32.vlgmr.msra.gmra.mrb[4].mxu1 %v3427_v39  ;;  %2811 = vmatpush3.bf16.msk.msra.mxu0 %vm5147_vm5, %v2972_v11  ;;  %vm5151_vm5 = vnez %v4971_v36 }
  0x72   :  { %2835 = vmatpush3.bf16.msk.msra.mxu1 %vm5148_vm11, %v2972_v11  ;;  %2812 = vmatprep.subr.bf16.mxu0 %v2969_v1  ;;  %vm5156_vm11 = vnez %v5003_v53 }
  0x73   :  { %2836 = vmatprep.subr.bf16.mxu1 %v2969_v1  ;;  %2487 = vmatprep.mubr.msk.f32.mxu0 %vm5018_vm12, %v2971_v5 }
  0x74   :  { %2522 = vmatprep.mubr.msk.f32.mxu1 %vm5018_vm12, %v2971_v5 }
  0x75   :  { %2814 = vmatpush3.bf16.msk.msra.mxu0 %vm5149_vm10, %v2972_v11  ;;  %vm5158_vm10 = vnez %v5010_v32 }
  0x76   :  { %2838 = vmatpush3.bf16.msk.msra.mxu1 %vm3987_vm14, %v2972_v11  ;;  %2815 = vmatprep.subr.bf16.mxu0 %v2969_v1  ;;  %vm5152_vm14 = vnez %v4983_v40 }
  0x77   :  { %2839 = vmatprep.subr.bf16.mxu1 %v2969_v1 }
  0x79   :  { %2817 = vmatpush3.bf16.msk.msra.mxu0 %vm4001_vm0, %v2972_v11  ;;  %vm5153_vm0 = vnez %v4987_v41 }
  0x7a   :  { %2841 = vmatpush3.bf16.msk.msra.mxu1 %vm5150_vm1, %v2972_v11  ;;  %2818 = vmatprep.subr.bf16.mxu0 %v2969_v1  ;;  %vm5159_vm1 = vnez %v5013_v33 }
  0x7b   :  { %2842 = vmatprep.subr.bf16.mxu1 %v2969_v1 }
  0x7d   :  { %2820 = vmatpush3.bf16.msk.msra.mxu0 %vm5151_vm5, %v2972_v11  ;;  %vm5160_vm5 = vnez %v5017_v43 }
  0x7e   :  { %2844 = vmatpush3.bf16.msk.msra.mxu1 %vm4043_vm8, %v2972_v11  ;;  %2821 = vmatprep.subr.bf16.mxu0 %v2969_v1  ;;  %vm5155_vm8 = vnez %v4999_v49 }
  0x7f   :  { %2845 = vmatprep.subr.bf16.mxu1 %v2969_v1 }
  0x81   :  { %2823 = vmatpush3.bf16.msk.msra.mxu0 %vm4057_vm4, %v2972_v11  ;;  %vm5154_vm4 = vnez %v4995_v47 }
  0x82   :  { %2847 = vmatpush3.bf16.msk.msra.mxu1 %vm5152_vm14, %v2972_v11  ;;  %2824 = vmatprep.subr.bf16.mxu0 %v2969_v1  ;;  %vm5161_vm14 = vnez %v5022_v46 }
  0x83   :  { %2848 = vmatprep.subr.bf16.mxu1 %v2969_v1 }
  0x85   :  { %2826 = vmatpush3.bf16.msk.msra.mxu0 %vm5153_vm0, %v2972_v11  ;;  %vm5162_vm0 = vnez %v5026_v61 }
  0x86   :  { %2850 = vmatpush3.bf16.msk.msra.mxu1 %vm4099_vm7, %v2972_v11  ;;  %2827 = vmatprep.subr.bf16.mxu0 %v2969_v1  ;;  %vm5157_vm7 = vnez %v5007_v55 }
  0x87   :  { %2851 = vmatprep.subr.bf16.mxu1 %v2969_v1 }
  0x89   :  { %2829 = vmatpush3.bf16.msk.msra.mxu0 %vm5154_vm4, %v2972_v11  ;;  %vm5163_vm4 = vnez %v5031_v63 }
  0x8a   :  { %2853 = vmatpush3.bf16.msk.msra.mxu1 %vm5155_vm8, %v2972_v11  ;;  %2830 = vmatprep.subr.bf16.mxu0 %v2969_v1  ;;  %vm5164_vm8 = vnez %v5036_v48 }
  0x8b   :  { %2854 = vmatprep.subr.bf16.mxu1 %v2969_v1 }
  0x8d   :  { %2832 = vmatpush3.bf16.msk.msra.mxu0 %vm5156_vm11, %v2972_v11  ;;  %vm5165_vm11 = vnez %v5040_v50 }
  0x8e   :  { %2856 = vmatpush3.bf16.msk.msra.mxu1 %vm5157_vm7, %v2972_v11  ;;  %2857 = vmatprep.subr.bf16.mxu0 %v2969_v1  ;;  %vm5166_vm7 = vnez %v5044_v24 }
  0x8f   :  { %2881 = vmatprep.subr.bf16.mxu1 %v2969_v1 }
  0x90   :  { %2488 = vmatmul.mubr.f32.vlgmr.msra.gmra.mrb[6].mxu0 %v3427_v39 }
  0x91   :  { %2523 = vmatmul.mubr.f32.vlgmr.msra.gmra.mrb[6].mxu1 %v3427_v39  ;;  %2859 = vmatpush3.bf16.msk.msra.mxu0 %vm5158_vm10, %v2972_v11  ;;  %vm5167_vm10 = vnez %v5049_v25 }
  0x92   :  { %2883 = vmatpush3.bf16.msk.msra.mxu1 %vm5159_vm1, %v2972_v11  ;;  %2860 = vmatprep.subr.bf16.mxu0 %v2969_v1  ;;  %vm5168_vm1 = vnez %v5054_v51 }
  0x93   :  { %2884 = vmatprep.subr.bf16.mxu1 %v2969_v1  ;;  %2557 = vmatprep.mubr.msk.f32.mxu0 %vm5018_vm12, %v2971_v5 }
  0x94   :  { %2592 = vmatprep.mubr.msk.f32.mxu1 %vm5018_vm12, %v2971_v5 }
  0x95   :  { %2862 = vmatpush3.bf16.msk.msra.mxu0 %vm5160_vm5, %v2972_v11  ;;  %vm5169_vm5 = vnez %v5058_v52 }
  0x96   :  { %2886 = vmatpush3.bf16.msk.msra.mxu1 %vm5161_vm14, %v2972_v11  ;;  %2863 = vmatprep.subr.bf16.mxu0 %v2969_v1  ;;  %vm5170_vm14 = vnez %v5062_v30 }
  0x97   :  { %2887 = vmatprep.subr.bf16.mxu1 %v2969_v1 }
  0x99   :  { %2865 = vmatpush3.bf16.msk.msra.mxu0 %vm5162_vm0, %v2972_v11  ;;  %vm5171_vm0 = vnez %v5067_v22 }
  0x9a   :  { %2889 = vmatpush3.bf16.msk.msra.mxu1 %vm5163_vm4, %v2972_v11  ;;  %2866 = vmatprep.subr.bf16.mxu0 %v2969_v1  ;;  %vm5172_vm4 = vnez %v5072_v54 }
  0x9b   :  { %2890 = vmatprep.subr.bf16.mxu1 %v2969_v1 }
  0x9d   :  { %2868 = vmatpush3.bf16.msk.msra.mxu0 %vm5164_vm8, %v2972_v11  ;;  %vm5176_vm8 = vnez %v5101_v7 }
  0x9e   :  { %2892 = vmatpush3.bf16.msk.msra.mxu1 %vm5165_vm11, %v2972_v11  ;;  %2869 = vmatprep.subr.bf16.mxu0 %v2969_v1  ;;  %vm5178_vm11 = vnez %v5110_v9 }
  0x9f   :  { %2893 = vmatprep.subr.bf16.mxu1 %v2969_v1 }
  0xa1   :  { %2871 = vmatpush3.bf16.msk.msra.mxu0 %vm5166_vm7, %v2972_v11  ;;  %vm5179_vm7 = vnez %v5114_v10 }
  0xa2   :  { %2895 = vmatpush3.bf16.msk.msra.mxu1 %vm5167_vm10, %v2972_v11  ;;  %2872 = vmatprep.subr.bf16.mxu0 %v2969_v1  ;;  %vm5180_vm10 = vnez %v5119_v12 }
  0xa3   :  { %2896 = vmatprep.subr.bf16.mxu1 %v2969_v1 }
  0xa5   :  { %2874 = vmatpush3.bf16.msk.msra.mxu0 %vm5168_vm1, %v2972_v11  ;;  %vm5181_vm1 = vnez %v5124_v13 }
  0xa6   :  { %2898 = vmatpush3.bf16.msk.msra.mxu1 %vm5169_vm5, %v2972_v11  ;;  %2875 = vmatprep.subr.bf16.mxu0 %v2969_v1  ;;  %vm5182_vm5 = vnez %v5128_v14 }
  0xa7   :  { %2899 = vmatprep.subr.bf16.mxu1 %v2969_v1 }
  0xa9   :  { %2877 = vmatpush3.bf16.msk.msra.mxu0 %vm5170_vm14, %v2972_v11  ;;  %vm5183_vm14 = vnez %v5132_v15 }
  0xaa   :  { %2901 = vmatpush3.bf16.msk.msra.mxu1 %vm5171_vm0, %v2972_v11  ;;  %2878 = vmatprep.subr.bf16.mxu0 %v2969_v1 }
  0xab   :  { %2902 = vmatprep.subr.bf16.mxu1 %v2969_v1 }
  0xad   :  { %2880 = vmatpush3.bf16.msk.msra.mxu0 %vm5172_vm4, %v2972_v11 }
  0xae   :  { %2904 = vmatpush3.bf16.msk.msra.mxu1 %vm4355_vm15, %v2972_v11  ;;  %2905 = vmatprep.subr.bf16.mxu0 %v2969_v1  ;;  %vm5173_vm15 = vnez %v5088_v57 }
  0xaf   :  { %2929 = vmatprep.subr.bf16.mxu1 %v2969_v1 }
  0xb0   :  { %2558 = vmatmul.mubr.f32.vlgmr.msra.gmra.mrb[8].mxu0 %v3427_v39 }
  0xb1   :  { %2593 = vmatmul.mubr.f32.vlgmr.msra.gmra.mrb[8].mxu1 %v3427_v39  ;;  %2907 = vmatpush3.bf16.msk.msra.mxu0 %vm4362_vm13, %v2972_v11  ;;  %vm5174_vm13 = vnez %v5092_v6 }
  0xb2   :  { %2931 = vmatpush3.bf16.msk.msra.mxu1 %vm4372_vm3, %v2972_v11  ;;  %2908 = vmatprep.subr.bf16.mxu0 %v2969_v1  ;;  %vm5175_vm3 = vnez %v5096_v59 }
  0xb3   :  { %2932 = vmatprep.subr.bf16.mxu1 %v2969_v1  ;;  %2627 = vmatprep.mubr.msk.f32.mxu0 %vm5018_vm12, %v2971_v5 }
  0xb4   :  { %2662 = vmatprep.mubr.msk.f32.mxu1 %vm5018_vm12, %v2971_v5  ;;  %vm5177_vm12 = vnez %v5106_v8 }
  0xb5   :  { %2910 = vmatpush3.bf16.msk.msra.mxu0 %vm5173_vm15, %v2972_v11 }
  0xb6   :  { %2934 = vmatpush3.bf16.msk.msra.mxu1 %vm5174_vm13, %v2972_v11  ;;  %2911 = vmatprep.subr.bf16.mxu0 %v2969_v1 }
  0xb7   :  { %2935 = vmatprep.subr.bf16.mxu1 %v2969_v1 }
  0xb9   :  { %2913 = vmatpush3.bf16.msk.msra.mxu0 %vm5175_vm3, %v2972_v11 }
  0xba   :  { %2937 = vmatpush3.bf16.msk.msra.mxu1 %vm5176_vm8, %v2972_v11  ;;  %2914 = vmatprep.subr.bf16.mxu0 %v2969_v1 }
  0xbb   :  { %2938 = vmatprep.subr.bf16.mxu1 %v2969_v1 }
  0xbd   :  { %2916 = vmatpush3.bf16.msk.msra.mxu0 %vm5177_vm12, %v2972_v11 }
  0xbe   :  { %2940 = vmatpush3.bf16.msk.msra.mxu1 %vm5178_vm11, %v2972_v11  ;;  %2917 = vmatprep.subr.bf16.mxu0 %v2969_v1 }
  0xbf   :  { %2941 = vmatprep.subr.bf16.mxu1 %v2969_v1 }
  0xc1   :  { %2919 = vmatpush3.bf16.msk.msra.mxu0 %vm5179_vm7, %v2972_v11 }
  0xc2   :  { %2943 = vmatpush3.bf16.msk.msra.mxu1 %vm5180_vm10, %v2972_v11  ;;  %2920 = vmatprep.subr.bf16.mxu0 %v2969_v1 }
  0xc3   :  { %2944 = vmatprep.subr.bf16.mxu1 %v2969_v1 }
  0xc5   :  { %2922 = vmatpush3.bf16.msk.msra.mxu0 %vm5181_vm1, %v2972_v11 }
  0xc6   :  { %2946 = vmatpush3.bf16.msk.msra.mxu1 %vm5182_vm5, %v2972_v11  ;;  %2923 = vmatprep.subr.bf16.mxu0 %v2969_v1 }
  0xc7   :  { %2947 = vmatprep.subr.bf16.mxu1 %v2969_v1 }
  0xc9   :  { %2925 = vmatpush3.bf16.msk.msra.mxu0 %vm5183_vm14, %v2972_v11 }
  0xca   :  { %2949 = vmatpush3.bf16.msk.msra.mxu1 %vm4516_vm9, %v2972_v11  ;;  %2926 = vmatprep.subr.bf16.mxu0 %v2969_v1 }
  0xcb   :  { %2950 = vmatprep.subr.bf16.mxu1 %v2969_v1 }
  0xcd   :  { %2928 = vmatpush3.bf16.msk.msra.mxu0 %vm4530_vm6, %v2972_v11 }
  0xce   :  { %2952 = vmatpush3.bf16.msk.msra.mxu1 %vm4541_vm2, %v2972_v11  ;;  %vm294_vm2 = vcmp.lt.s32.totalorder %v3000_v3, 3 }
  0xd0   :  { %2628 = vmatmul.mubr.f32.vlgmr.msra.gmra.mrb[10].mxu0 %v3427_v39 }
  0xd1   :  { %2663 = vmatmul.mubr.f32.vlgmr.msra.gmra.mrb[10].mxu1 %v3427_v39 }
  0xfa   :  { %v152_v5 = vpop.f32.mrb[0].mxu0 }
  0xfb   :  { %v274_v19 = vpop.f32.mrb[0].mxu1  ;;  %v2279_v20 = vpop.f32.mrb[1].mxu0 }
  0xfc   :  { %v278_v21 = vsub.f32 %v152_v5, %v274_v19  ;;  %v2314_v58 = vpop.f32.mrb[1].mxu1 }
  0xfe   :  { %v279_v60 = vmul.f32 %v278_v21, %v278_v21 }
 0x100   :  { %v281_v62 = vrot.slane %v279_v60, 1  ;;  %v284_v1 = vrot.slane %v279_v60, 2 }
 0x102   :  { %v283_v0 = vadd.f32 %v281_v62, %v279_v60 }
 0x104   :  { %v286_v2 = vadd.f32 %v284_v1, %v283_v0 }
 0x106   :  { %2957 = vrsqrt.f32 %v286_v2  ;;  %vm289_vm9 = vcmp.eq.f32.partialorder %v286_v2, inf  ;;  %v292_v11 = vand.u32 2147483648, %v286_v2  ;;  %vm291_vm6 = vcmp.eq.f32.partialorder %v286_v2, 0.0 }
 0x110   :  { %v2958_v4 = vpop.eup %2957 }
 0x111   :  { %v288_v26 = vmul.f32 %v2958_v4, %v286_v2 }
 0x113   :  { %v290_v27 = vsel %vm289_vm9, %v286_v2, %v288_v26 }
 0x114   :  { %v293_v39 = vsel %vm291_vm6, %v292_v11, %v290_v27 }
 0x115   :  { %v298_v29 = vrot.slane %v293_v39, %v4756_v28 }
 0x117   :  { %v299_v31 = vsel %vm294_vm2, %v278_v21, %v298_v29 }
 0x118   :  { %300 = vst [vmem:[%s4798_s3] sm:$0xf] %v299_v31 }
 0x11a   :  { %v421_v34 = vpop.f32.mrb[2].mxu0 }
 0x11b   :  { %v543_v23 = vpop.f32.mrb[2].mxu1  ;;  %v2349_v35 = vpop.f32.mrb[3].mxu0 }
 0x11c   :  { %v547_v36 = vsub.f32 %v421_v34, %v543_v23  ;;  %v2384_v37 = vpop.f32.mrb[3].mxu1 }
 0x11e   :  { %v548_v38 = vmul.f32 %v547_v36, %v547_v36 }
 0x120   :  { %v550_v40 = vrot.slane %v548_v38, 1  ;;  %v553_v41 = vrot.slane %v548_v38, 2 }
 0x122   :  { %v552_v42 = vadd.f32 %v550_v40, %v548_v38 }
 0x124   :  { %v555_v47 = vadd.f32 %v553_v41, %v552_v42 }
 0x126   :  { %2959 = vrsqrt.f32 %v555_v47  ;;  %vm558_vm0 = vcmp.eq.f32.partialorder %v555_v47, inf  ;;  %v561_v55 = vand.u32 2147483648, %v555_v47  ;;  %vm560_vm4 = vcmp.eq.f32.partialorder %v555_v47, 0.0 }
 0x130   :  { %v2960_v49 = vpop.eup %2959 }
 0x131   :  { %v557_v53 = vmul.f32 %v2960_v49, %v555_v47 }
 0x133   :  { %v559_v32 = vsel %vm558_vm0, %v555_v47, %v557_v53 }
 0x134   :  { %v562_v33 = vsel %vm560_vm4, %v561_v55, %v559_v32 }
 0x135   :  { %v566_v43 = vrot.slane %v562_v33, %v4756_v28 }
 0x137   :  { %v567_v46 = vsel %vm294_vm2, %v547_v36, %v566_v43 }
 0x138   :  { %568 = vst [vmem:[%s4798_s3 + $0x4] sm:$0xf] %v567_v46 }
 0x143   :  { %v689_v61 = vpop.f32.mrb[4].mxu0 }
 0x144   :  { %v811_v63 = vpop.f32.mrb[4].mxu1  ;;  %v2419_v48 = vpop.f32.mrb[5].mxu0 }
 0x145   :  { %v815_v50 = vsub.f32 %v689_v61, %v811_v63  ;;  %v2454_v24 = vpop.f32.mrb[5].mxu1 }
 0x147   :  { %v816_v25 = vmul.f32 %v815_v50, %v815_v50 }
 0x149   :  { %v818_v51 = vrot.slane %v816_v25, 1  ;;  %v821_v52 = vrot.slane %v816_v25, 2 }
 0x14b   :  { %v820_v30 = vadd.f32 %v818_v51, %v816_v25 }
 0x14d   :  { %v823_v22 = vadd.f32 %v821_v52, %v820_v30 }
 0x14f   :  { %2961 = vrsqrt.f32 %v823_v22  ;;  %vm826_vm15 = vcmp.eq.f32.partialorder %v823_v22, inf  ;;  %v829_v44 = vand.u32 2147483648, %v823_v22  ;;  %vm828_vm13 = vcmp.eq.f32.partialorder %v823_v22, 0.0 }
 0x159   :  { %v2962_v54 = vpop.eup %2961 }
 0x15a   :  { %v825_v56 = vmul.f32 %v2962_v54, %v823_v22 }
 0x15c   :  { %v827_v45 = vsel %vm826_vm15, %v823_v22, %v825_v56 }
 0x15d   :  { %v830_v57 = vsel %vm828_vm13, %v829_v44, %v827_v45 }
 0x15e   :  { %v834_v6 = vrot.slane %v830_v57, %v4756_v28 }
 0x160   :  { %v835_v59 = vsel %vm294_vm2, %v815_v50, %v834_v6 }
 0x161   :  { %836 = vst [vmem:[%s4798_s3 + $0x8] sm:$0xf] %v835_v59 }
 0x163   :  { %v957_v7 = vpop.f32.mrb[6].mxu0 }
 0x164   :  { %v1079_v8 = vpop.f32.mrb[6].mxu1  ;;  %v2489_v9 = vpop.f32.mrb[7].mxu0 }
 0x165   :  { %v1083_v10 = vsub.f32 %v957_v7, %v1079_v8  ;;  %v2524_v12 = vpop.f32.mrb[7].mxu1 }
 0x167   :  { %v1084_v13 = vmul.f32 %v1083_v10, %v1083_v10 }
 0x169   :  { %v1086_v14 = vrot.slane %v1084_v13, 1  ;;  %v1089_v15 = vrot.slane %v1084_v13, 2 }
 0x16b   :  { %v1088_v16 = vadd.f32 %v1086_v14, %v1084_v13 }
 0x16d   :  { %v1091_v17 = vadd.f32 %v1089_v15, %v1088_v16 }
 0x16f   :  { %2963 = vrsqrt.f32 %v1091_v17  ;;  %vm1094_vm3 = vcmp.eq.f32.partialorder %v1091_v17, inf  ;;  %v1097_v19 = vand.u32 2147483648, %v1091_v17  ;;  %vm1096_vm8 = vcmp.eq.f32.partialorder %v1091_v17, 0.0 }
 0x179   :  { %v2964_v18 = vpop.eup %2963 }
 0x17a   :  { %v1093_v5 = vmul.f32 %v2964_v18, %v1091_v17 }
 0x17c   :  { %v1095_v20 = vsel %vm1094_vm3, %v1091_v17, %v1093_v5 }
 0x17d   :  { %v1098_v21 = vsel %vm1096_vm8, %v1097_v19, %v1095_v20 }
 0x17e   :  { %v1102_v58 = vrot.slane %v1098_v21, %v4756_v28 }
 0x180   :  { %v1103_v60 = vsel %vm294_vm2, %v1083_v10, %v1102_v58 }
 0x181   :  { %1104 = vst [vmem:[%s4798_s3 + $0xc] sm:$0xf] %v1103_v60 }
 0x183   :  { %v1225_v62 = vpop.f32.mrb[8].mxu0 }
 0x184   :  { %v1347_v1 = vpop.f32.mrb[8].mxu1  ;;  %v2559_v0 = vpop.f32.mrb[9].mxu0 }
 0x185   :  { %v1351_v2 = vsub.f32 %v1225_v62, %v1347_v1  ;;  %v2594_v4 = vpop.f32.mrb[9].mxu1 }
 0x187   :  { %v1352_v26 = vmul.f32 %v1351_v2, %v1351_v2 }
 0x189   :  { %v1354_v11 = vrot.slane %v1352_v26, 1  ;;  %v1357_v27 = vrot.slane %v1352_v26, 2 }
 0x18b   :  { %v1356_v39 = vadd.f32 %v1354_v11, %v1352_v26 }
 0x18d   :  { %v1359_v29 = vadd.f32 %v1357_v27, %v1356_v39 }
 0x18f   :  { %2965 = vrsqrt.f32 %v1359_v29  ;;  %vm1362_vm12 = vcmp.eq.f32.partialorder %v1359_v29, inf  ;;  %v1365_v23 = vand.u32 2147483648, %v1359_v29  ;;  %vm1364_vm11 = vcmp.eq.f32.partialorder %v1359_v29, 0.0 }
 0x199   :  { %v2966_v31 = vpop.eup %2965 }
 0x19a   :  { %v1361_v34 = vmul.f32 %v2966_v31, %v1359_v29 }
 0x19c   :  { %v1363_v35 = vsel %vm1362_vm12, %v1359_v29, %v1361_v34 }
 0x19d   :  { %v1366_v36 = vsel %vm1364_vm11, %v1365_v23, %v1363_v35 }
 0x19e   :  { %v1370_v37 = vrot.slane %v1366_v36, %v4756_v28 }
 0x1a0   :  { %v1371_v38 = vsel %vm294_vm2, %v1351_v2, %v1370_v37 }
 0x1a1   :  { %1372 = vst [vmem:[%s4798_s3 + $0x10] sm:$0xf] %v1371_v38 }
 0x1a3   :  { %v1493_v40 = vpop.f32.mrb[10].mxu0 }
 0x1a4   :  { %v1615_v41 = vpop.f32.mrb[10].mxu1  ;;  %v2629_v42 = vpop.f32.mrb[11].mxu0 }
 0x1a5   :  { %v1619_v47 = vsub.f32 %v1493_v40, %v1615_v41  ;;  %v2664_v49 = vpop.f32.mrb[11].mxu1 }
 0x1a7   :  { %v1620_v53 = vmul.f32 %v1619_v47, %v1619_v47 }
 0x1a9   :  { %v1622_v55 = vrot.slane %v1620_v53, 1  ;;  %v1625_v33 = vrot.slane %v1620_v53, 2 }
 0x1ab   :  { %v1624_v32 = vadd.f32 %v1622_v55, %v1620_v53 }
 0x1ad   :  { %v1627_v43 = vadd.f32 %v1625_v33, %v1624_v32 }
 0x1af   :  { %2967 = vrsqrt.f32 %v1627_v43  ;;  %vm1630_vm7 = vcmp.eq.f32.partialorder %v1627_v43, inf  ;;  %v1633_v63 = vand.u32 2147483648, %v1627_v43  ;;  %vm1632_vm10 = vcmp.eq.f32.partialorder %v1627_v43, 0.0 }
 0x1b9   :  { %v2968_v46 = vpop.eup %2967 }
 0x1ba   :  { %v1629_v61 = vmul.f32 %v2968_v46, %v1627_v43 }
 0x1bc   :  { %v1631_v48 = vsel %vm1630_vm7, %v1627_v43, %v1629_v61 }
 0x1bd   :  { %v1634_v50 = vsel %vm1632_vm10, %v1633_v63, %v1631_v48 }
 0x1be   :  { %v1638_v24 = vrot.slane %v1634_v50, %v4756_v28 }
 0x1c0   :  { %v1639_v25 = vsel %vm294_vm2, %v1619_v47, %v1638_v24 }
 0x1c1   :  { %1640 = vst [vmem:[%s4798_s3 + $0x14] sm:$0xf] %v1639_v25 }

</bundles_post_ra>
